<compile_context>
chip_gen: v7x
topology: tpu7x:2x2x1
jax: 0.10.0
libtpu: 0.0.40
codegen_flags: <defaults>
</compile_context>

<pallas_src>
import functools

import jax
import jax.numpy as jnp
from jax.experimental import pallas as pl
from jax.experimental.pallas import tpu as pltpu

LN_EPS = 1e-5
GINE_EPS = 0.0  # PyG GINEConv default


def _round_up(v, m):
    return (v + m - 1) // m * m


def _pad_to(a, shape, value=0):
    return jnp.pad(a, [(0, s - d) for d, s in zip(a.shape, shape)],
                   constant_values=value)


# ----------------------------------------------------------------------------
# Fused kernel: grid = (layer, edge_tile)
# ----------------------------------------------------------------------------
def gnn_fused_kernel(n_hidden,                              # static
                     src_ref, dst_ref, x0_ref, ea_ref,
                     we_ref, be_ref, w1_ref, b1_ref, w2_ref, b2_ref,
                     gamma_ref, beta_ref, wo_ref, bo_ref,
                     out_ref,
                     x_vmem, aggr_vmem):
    layer = pl.program_id(0)
    tile = pl.program_id(1)
    n_layers = pl.num_programs(0)
    n_tiles = pl.num_programs(1)

    tile_e = src_ref.shape[0]
    n_pad = x_vmem.shape[0]

    # ---- init: load node features once; zero the scatter accumulator per layer
    @pl.when(jnp.logical_and(layer == 0, tile == 0))
    def _():
        x_vmem[...] = x0_ref[...]

    @pl.when(tile == 0)
    def _():
        aggr_vmem[...] = jnp.zeros_like(aggr_vmem)

    # ---- edge phase: edge embedding, one-hot gather, message, one-hot scatter
    # e = Lin_e(edge_attr_tile)   (bf16 MXU, f32 accumulate)
    e = jnp.dot(ea_ref[...], we_ref[0],
                preferred_element_type=jnp.float32) + be_ref[0]

    # one-hot rows from indices already on-chip; padded edges have idx == -1
    # -> all-zero rows, so they gather zeros and scatter nothing.
    node_iota = jax.lax.broadcasted_iota(jnp.int32, (tile_e, n_pad), 1)
    one_hot_src = (node_iota == src_ref[...]).astype(jnp.bfloat16)
    one_hot_dst = (node_iota == dst_ref[...]).astype(jnp.bfloat16)

    # gather x[src] with the MXU: (tile_e, N_pad) @ (N_pad, D_pad)
    x_bf16 = x_vmem[...].astype(jnp.bfloat16)
    x_j = jnp.dot(one_hot_src, x_bf16, preferred_element_type=jnp.float32)

    # msg = ReLU(x_j + e)
    msg = jnp.maximum(x_j + e, 0.0).astype(jnp.bfloat16)

    # scatter-add to destination rows with the MXU (duplicate dst handled by sum)
    aggr_vmem[...] += jax.lax.dot_general(
        one_hot_dst, msg,
        dimension_numbers=(((0,), (0,)), ((), ())),
        preferred_element_type=jnp.float32)

    # ---- node phase (after the last edge tile of this layer) ---------------
    @pl.when(tile == n_tiles - 1)
    def _():
        x = x_vmem[...]
        h = (1.0 + GINE_EPS) * x + aggr_vmem[...]

        # GINE MLP: Linear -> ReLU -> Linear (bf16 MXU, f32 accumulate)
        h = jnp.dot(h.astype(jnp.bfloat16), w1_ref[0],
                    preferred_element_type=jnp.float32) + b1_ref[0]
        h = jnp.maximum(h, 0.0)
        h = jnp.dot(h.astype(jnp.bfloat16), w2_ref[0],
                    preferred_element_type=jnp.float32) + b2_ref[0]

        # LayerNorm over the TRUE hidden width (padded lanes masked out)
        col = jax.lax.broadcasted_iota(jnp.int32, (1, h.shape[-1]), 1)
        cmask = (col < n_hidden).astype(jnp.float32)
        inv_h = 1.0 / float(n_hidden)
        mu = jnp.sum(h * cmask, axis=-1, keepdims=True) * inv_h
        cen = (h - mu) * cmask
        var = jnp.sum(cen * cen, axis=-1, keepdims=True) * inv_h
        h = cen * jax.lax.rsqrt(var + LN_EPS) * gamma_ref[0] + beta_ref[0]

        # exact (erf-based) GELU, matching nn.GELU default
        h = 0.5 * h * (1.0 + jax.lax.erf(h * 0.7071067811865476))

        # dropout p=0 -> identity; residual with layer input
        x_new = h + x
        x_vmem[...] = x_new

        # fused output head on the final layer
        @pl.when(layer == n_layers - 1)
        def _():
            out_ref[...] = (jnp.dot(x_new.astype(jnp.bfloat16), wo_ref[...],
                                    preferred_element_type=jnp.float32)
                            + bo_ref[...]).astype(out_ref.dtype)


# ----------------------------------------------------------------------------
# Wrapper
# ----------------------------------------------------------------------------
def gnn_forward(x, edge_index, edge_attr, layer_params, out_w, out_b,
                *, tile_e_max=1024):
    N, d_in = x.shape
    E, De = edge_attr.shape
    L = len(layer_params)
    H = layer_params[0]["w2"].shape[1]
    O = out_w.shape[1]
    if d_in != H:
        raise ValueError("residual path requires in_features == hidden_features")

    # lane-dense padding for node/feature dims; edge_dim stays unpadded
    D_pad = _round_up(H, 128)
    O_pad = _round_up(O, 128)
    N_pad = _round_up(N, 128)          # one-hot lane dim + MXU contraction dim
    tile_e = min(tile_e_max, _round_up(E, 8))
    E_pad = _round_up(E, tile_e)
    n_tiles = E_pad // tile_e

    x0 = _pad_to(x, (N_pad, D_pad)).astype(jnp.float32)        # keep f32
    ea = _pad_to(edge_attr, (E_pad, De)).astype(jnp.bfloat16)
    # padded edges get index -1 -> all-zero one-hot rows in the kernel
    src = _pad_to(edge_index[0].astype(jnp.int32), (E_pad,), value=-1)[:, None]
    dst = _pad_to(edge_index[1].astype(jnp.int32), (E_pad,), value=-1)[:, None]

    def stack(name, shape, dtype=jnp.float32):
        return jnp.stack([_pad_to(p[name], shape) for p in layer_params]).astype(dtype)

    We = stack("we", (De, D_pad), jnp.bfloat16)
    be = stack("be", (1, D_pad))
    W1 = stack("w1", (D_pad, D_pad), jnp.bfloat16)
    b1 = stack("b1", (1, D_pad))
    W2 = stack("w2", (D_pad, D_pad), jnp.bfloat16)
    b2 = stack("b2", (1, D_pad))
    gm = stack("gamma", (1, D_pad))
    bt = stack("beta", (1, D_pad))
    Wo = _pad_to(out_w, (D_pad, O_pad)).astype(jnp.bfloat16)
    bo = _pad_to(out_b, (1, O_pad))

    def const_spec(shape):
        return pl.BlockSpec(shape, lambda l, t: (0,) * len(shape))

    def layer_spec(shape):
        return pl.BlockSpec((1,) + shape, lambda l, t: (l,) + (0,) * len(shape))

    edge_spec = pl.BlockSpec((tile_e, De), lambda l, t: (t, 0))
    idx_spec = pl.BlockSpec((tile_e, 1), lambda l, t: (t, 0))

    in_specs = [
        idx_spec,                        # src (tile_e, 1) int32
        idx_spec,                        # dst (tile_e, 1) int32
        const_spec((N_pad, D_pad)),      # x0 (loaded once, f32)
        edge_spec,                       # edge_attr tiles (pipelined)
        layer_spec((De, D_pad)),         # We
        layer_spec((1, D_pad)),          # be
        layer_spec((D_pad, D_pad)),      # W1
        layer_spec((1, D_pad)),          # b1
        layer_spec((D_pad, D_pad)),      # W2
        layer_spec((1, D_pad)),          # b2
        layer_spec((1, D_pad)),          # gamma
        layer_spec((1, D_pad)),          # beta
        const_spec((D_pad, O_pad)),      # Wout
        const_spec((1, O_pad)),          # bout
    ]

    # explicit scoped-VMEM budget sized from actual residents (+ headroom)
    vmem_bytes = (
        2 * N_pad * D_pad * 4                          # x_vmem + aggr_vmem
        + 2 * N_pad * D_pad * 4                        # x0 (double-buffered)
        + 2 * N_pad * O_pad * 4                        # output buffers
        + 2 * (tile_e * De * 2 + 2 * tile_e * 4)       # edge_attr + src/dst tiles
        + 2 * (De * D_pad + 2 * D_pad * D_pad) * 2     # We, W1, W2 (bf16)
        + 2 * 6 * D_pad * 4                            # biases / gamma / beta
        + 2 * (D_pad * O_pad * 2 + O_pad * 4)          # Wout, bout
        + 4 * tile_e * N_pad * 2                       # in-flight one-hots / msgs
    )
    vmem_limit = min(int(vmem_bytes * 2) + (8 << 20), 64 << 20)

    flops = int(L * (2 * E_pad * De * D_pad + 4 * E_pad * N_pad * D_pad
                     + 4 * N_pad * D_pad * D_pad + 4 * E_pad * D_pad)
                + 2 * N_pad * D_pad * O_pad)
    transcendentals = int(L * N_pad * D_pad)
    bytes_accessed = int(
        N_pad * D_pad * 4 + L * (E_pad * De * 2 + 2 * E_pad * 4)
        + L * (De * D_pad * 2 + 2 * D_pad * D_pad * 2 + 6 * D_pad * 4)
        + D_pad * O_pad * 2 + O_pad * 4 + N_pad * O_pad * 4)

    kernel = functools.partial(gnn_fused_kernel, H)

    out = pl.pallas_call(
        kernel,
        grid_spec=pltpu.PrefetchScalarGridSpec(
            num_scalar_prefetch=0,
            grid=(L, n_tiles),
            in_specs=in_specs,
            out_specs=const_spec((N_pad, O_pad)),
            scratch_shapes=[
                pltpu.VMEM((N_pad, D_pad), jnp.float32),   # resident node features
                pltpu.VMEM((N_pad, D_pad), jnp.float32),   # scatter accumulator
            ]),
        out_shape=jax.ShapeDtypeStruct((N_pad, O_pad), jnp.float32),
        compiler_params=pltpu.CompilerParams(
            dimension_semantics=("arbitrary", "arbitrary"),
            vmem_limit_bytes=vmem_limit),
        cost_estimate=pl.CostEstimate(flops=flops,
                                      transcendentals=transcendentals,
                                      bytes_accessed=bytes_accessed),
    )(src, dst, x0, ea, We, be, W1, b1, W2, b2, gm, bt, Wo, bo)

    return out[:N, :O]


# ----------------------------------------------------------------------------
# Pure-JAX reference (for a loose sanity check of the fused kernel)
# ----------------------------------------------------------------------------
def gnn_reference(x, edge_index, edge_attr, layer_params, out_w, out_b):
    src, dst = edge_index[0], edge_index[1]
    for p in layer_params:
        e = edge_attr @ p["we"] + p["be"]
        msg = jax.nn.relu(x[src] + e)
        aggr = jnp.zeros_like(x).at[dst].add(msg)
        h = (1.0 + GINE_EPS) * x + aggr
        h = jax.nn.relu(h @ p["w1"] + p["b1"]) @ p["w2"] + p["b2"]
        mu = jnp.mean(h, axis=-1, keepdims=True)
        var = jnp.mean((h - mu) ** 2, axis=-1, keepdims=True)
        h = (h - mu) * jax.lax.rsqrt(var + LN_EPS) * p["gamma"] + p["beta"]
        h = 0.5 * h * (1.0 + jax.lax.erf(h * 0.7071067811865476))
        x = h + x
    return x @ out_w + out_b


# ----------------------------------------------------------------------------
# Deterministic parameter init (PyTorch-Linear-style uniform)
# ----------------------------------------------------------------------------
def _lin_init(key, fan_in, fan_out):
    kw, kb = jax.random.split(key)
    bound = 1.0 / jnp.sqrt(fan_in)
    w = jax.random.uniform(kw, (fan_in, fan_out), jnp.float32, -bound, bound)
    b = jax.random.uniform(kb, (1, fan_out), jnp.float32, -bound, bound)
    return w, b


def make_params(key, in_features, hidden, out_features, edge_dim, num_layers):
    layer_params = []
    for i in range(num_layers):
        key, k1, k2, k3 = jax.random.split(key, 4)
        d_in = in_features if i == 0 else hidden
        we, be = _lin_init(k1, edge_dim, d_in)   # edge encoder -> layer input dim
        w1, b1 = _lin_init(k2, d_in, hidden)
        w2, b2 = _lin_init(k3, hidden, hidden)
        layer_params.append(dict(
            we=we, be=be, w1=w1, b1=b1, w2=w2, b2=b2,
            gamma=jnp.ones((1, hidden), jnp.float32),
            beta=jnp.zeros((1, hidden), jnp.float32),
        ))
    key, ko = jax.random.split(key)
    out_w, out_b = _lin_init(ko, hidden, out_features)
    return layer_params, out_w, out_b


# ----------------------------------------------------------------------------
if __name__ == "__main__":
    # small synthetic graph
    num_nodes = 64
    num_edges = 256
    in_features = 64           # residual requires in_features == hidden_features
    hidden_features = 64
    out_features = 16
    edge_dim = 32
    num_layers = 3

    key = jax.random.PRNGKey(0)
    kx, ke, ks, kd, kp = jax.random.split(key, 5)

    x = jax.random.normal(kx, (num_nodes, in_features), jnp.float32)
    edge_attr = jax.random.normal(ke, (num_edges, edge_dim), jnp.float32)
    src = jax.random.randint(ks, (num_edges,), 0, num_nodes)
    dst = jax.random.randint(kd, (num_edges,), 0, num_nodes)
    edge_index = jnp.stack([src, dst], axis=0)   # (2, E), PyG convention

    layer_params, out_w, out_b = make_params(
        kp, in_features, hidden_features, out_features, edge_dim, num_layers)

    fwd = jax.jit(gnn_forward)
    out = fwd(x, edge_index, edge_attr, layer_params, out_w, out_b)
    jax.block_until_ready(out)

    assert out.shape == (num_nodes, out_features)
    assert bool(jnp.all(jnp.isfinite(out)))

    # loose tolerance: MXU inputs (incl. one-hot gather/scatter) run in bf16
    ref = gnn_reference(x, edge_index, edge_attr, layer_params, out_w, out_b)
    assert bool(jnp.allclose(out, ref, atol=2e-1, rtol=2e-1))

    print("KERNEL_OK")
</pallas_src>

<mosaic_0001>
module attributes {stable_mosaic.version = 11 : i64} {
  func.func @gnn_fused_kernel(%arg0: i32, %arg1: i32, %arg2: memref<256x1xi32, #tpu.memory_space<vmem>>, %arg3: memref<256x1xi32, #tpu.memory_space<vmem>>, %arg4: memref<128x128xf32, #tpu.memory_space<vmem>>, %arg5: memref<256x32xbf16, #tpu.memory_space<vmem>>, %arg6: memref<1x32x128xbf16, #tpu.memory_space<vmem>>, %arg7: memref<1x1x128xf32, #tpu.memory_space<vmem>>, %arg8: memref<1x128x128xbf16, #tpu.memory_space<vmem>>, %arg9: memref<1x1x128xf32, #tpu.memory_space<vmem>>, %arg10: memref<1x128x128xbf16, #tpu.memory_space<vmem>>, %arg11: memref<1x1x128xf32, #tpu.memory_space<vmem>>, %arg12: memref<1x1x128xf32, #tpu.memory_space<vmem>>, %arg13: memref<1x1x128xf32, #tpu.memory_space<vmem>>, %arg14: memref<128x128xbf16, #tpu.memory_space<vmem>>, %arg15: memref<1x128xf32, #tpu.memory_space<vmem>>, %arg16: memref<128x128xf32, #tpu.memory_space<vmem>>, %arg17: memref<128x128xf32, #tpu.memory_space<vmem>>, %arg18: memref<128x128xf32, #tpu.memory_space<vmem>>) attributes {dimension_semantics = [#tpu.dimension_semantics<arbitrary>, #tpu.dimension_semantics<arbitrary>], iteration_bounds = array<i64: 3, 1>, scalar_prefetch = 0 : i64, scratch_operands = 2 : i64, tpu.core_type = #tpu.core_type<tc>, window_params = [{transform_indices = @transform_0, window_bounds = array<i64: 256, 1>}, {transform_indices = @transform_1, window_bounds = array<i64: 256, 1>}, {pipeline_mode = #tpu.pipeline_mode<synchronous>, transform_indices = @transform_2, window_bounds = array<i64: 128, 128>}, {transform_indices = @transform_3, window_bounds = array<i64: 256, 32>}, {transform_indices = @transform_4, window_bounds = array<i64: 1, 32, 128>}, {transform_indices = @transform_5, window_bounds = array<i64: 1, 1, 128>}, {transform_indices = @transform_6, window_bounds = array<i64: 1, 128, 128>}, {transform_indices = @transform_7, window_bounds = array<i64: 1, 1, 128>}, {transform_indices = @transform_8, window_bounds = array<i64: 1, 128, 128>}, {transform_indices = @transform_9, window_bounds = array<i64: 1, 1, 128>}, {transform_indices = @transform_10, window_bounds = array<i64: 1, 1, 128>}, {transform_indices = @transform_11, window_bounds = array<i64: 1, 1, 128>}, {pipeline_mode = #tpu.pipeline_mode<synchronous>, transform_indices = @transform_12, window_bounds = array<i64: 128, 128>}, {pipeline_mode = #tpu.pipeline_mode<synchronous>, transform_indices = @transform_13, window_bounds = array<i64: 1, 128>}, {pipeline_mode = #tpu.pipeline_mode<synchronous>, transform_indices = @transform_14, window_bounds = array<i64: 128, 128>}]} {
    %c0_i32 = arith.constant 0 : i32
    %0 = arith.cmpi eq, %arg0, %c0_i32 : i32
    %c0_i32_0 = arith.constant 0 : i32
    %1 = arith.cmpi eq, %arg1, %c0_i32_0 : i32
    %2 = arith.andi %0, %1 : i1
    %3 = arith.extui %2 : i1 to i32
    %c0_i32_1 = arith.constant 0 : i32
    %4 = arith.cmpi ne, %3, %c0_i32_1 : i32
    scf.if %4 {
      %c0_26 = arith.constant 0 : index
      %c0_27 = arith.constant 0 : index
      %43 = vector.load %arg4[%c0_26, %c0_27] : memref<128x128xf32, #tpu.memory_space<vmem>>, vector<128x128xf32>
      %c0_28 = arith.constant 0 : index
      %c0_29 = arith.constant 0 : index
      %44 = vector.load %arg17[%c0_28, %c0_29] : memref<128x128xf32, #tpu.memory_space<vmem>>, vector<128x128xf32>
      tpu.vector_store %arg17[%c0_28, %c0_29], %43 {strides = array<i32>} : memref<128x128xf32, #tpu.memory_space<vmem>>, vector<128x128xf32>,
    } else {
    }
    %c0_i32_2 = arith.constant 0 : i32
    %5 = arith.cmpi eq, %arg1, %c0_i32_2 : i32
    %6 = arith.extui %5 : i1 to i32
    %c0_i32_3 = arith.constant 0 : i32
    %7 = arith.cmpi ne, %6, %c0_i32_3 : i32
    scf.if %7 {
      %cst_26 = arith.constant 0.000000e+00 : f32
      %43 = vector.broadcast %cst_26 : f32 to vector<128x128xf32>
      %c0_27 = arith.constant 0 : index
      %c0_28 = arith.constant 0 : index
      %44 = vector.load %arg18[%c0_27, %c0_28] : memref<128x128xf32, #tpu.memory_space<vmem>>, vector<128x128xf32>
      tpu.vector_store %arg18[%c0_27, %c0_28], %43 {strides = array<i32>} : memref<128x128xf32, #tpu.memory_space<vmem>>, vector<128x128xf32>,
    } else {
    }
    %c0 = arith.constant 0 : index
    %c0_4 = arith.constant 0 : index
    %8 = vector.load %arg5[%c0, %c0_4] : memref<256x32xbf16, #tpu.memory_space<vmem>>, vector<256x32xbf16>
    %c0_5 = arith.constant 0 : index
    %c0_6 = arith.constant 0 : index
    %c0_7 = arith.constant 0 : index
    %9 = vector.load %arg6[%c0_5, %c0_6, %c0_7] : memref<1x32x128xbf16, #tpu.memory_space<vmem>>, vector<1x32x128xbf16>
    %10 = vector.shape_cast %9 : vector<1x32x128xbf16> to vector<32x128xbf16>
    %cst = arith.constant dense<0.000000e+00> : vector<256x128xf32>
    %11 = tpu.matmul %8, %10, %cst {dimension_numbers = #tpu.dot_dimension_numbers<[1], [0], [0], [1], [0, 0, 1, 1], [], []>} : vector<256x32xbf16>, vector<32x128xbf16>, vector<256x128xf32> -> vector<256x128xf32>
    %c0_8 = arith.constant 0 : index
    %c0_9 = arith.constant 0 : index
    %c0_10 = arith.constant 0 : index
    %12 = vector.load %arg7[%c0_8, %c0_9, %c0_10] : memref<1x1x128xf32, #tpu.memory_space<vmem>>, vector<1x1x128xf32>
    %13 = vector.shape_cast %12 : vector<1x1x128xf32> to vector<1x128xf32>
    %14 = vector.broadcast %13 : vector<1x128xf32> to vector<256x128xf32>
    %15 = arith.addf %11, %14 : vector<256x128xf32>
    %16 = tpu.iota {dimensions = array<i32: 1>} : vector<256x128xi32>
    %c0_11 = arith.constant 0 : index
    %c0_12 = arith.constant 0 : index
    %17 = vector.load %arg2[%c0_11, %c0_12] : memref<256x1xi32, #tpu.memory_space<vmem>>, vector<256x1xi32>
    %18 = vector.broadcast %17 : vector<256x1xi32> to vector<256x128xi32>
    %19 = arith.cmpi eq, %16, %18 : vector<256x128xi32>
    %20 = arith.extui %19 : vector<256x128xi1> to vector<256x128xi32>
    %21 = arith.sitofp %20 : vector<256x128xi32> to vector<256x128xf32>
    %22 = arith.truncf %21 : vector<256x128xf32> to vector<256x128xbf16>
    %c0_13 = arith.constant 0 : index
    %c0_14 = arith.constant 0 : index
    %23 = vector.load %arg3[%c0_13, %c0_14] : memref<256x1xi32, #tpu.memory_space<vmem>>, vector<256x1xi32>
    %24 = vector.broadcast %23 : vector<256x1xi32> to vector<256x128xi32>
    %25 = arith.cmpi eq, %16, %24 : vector<256x128xi32>
    %26 = arith.extui %25 : vector<256x128xi1> to vector<256x128xi32>
    %27 = arith.sitofp %26 : vector<256x128xi32> to vector<256x128xf32>
    %28 = arith.truncf %27 : vector<256x128xf32> to vector<256x128xbf16>
    %c0_15 = arith.constant 0 : index
    %c0_16 = arith.constant 0 : index
    %29 = vector.load %arg17[%c0_15, %c0_16] : memref<128x128xf32, #tpu.memory_space<vmem>>, vector<128x128xf32>
    %30 = arith.truncf %29 : vector<128x128xf32> to vector<128x128xbf16>
    %cst_17 = arith.constant dense<0.000000e+00> : vector<256x128xf32>
    %31 = tpu.matmul %22, %30, %cst_17 {dimension_numbers = #tpu.dot_dimension_numbers<[1], [0], [0], [1], [0, 0, 1, 1], [], []>} : vector<256x128xbf16>, vector<128x128xbf16>, vector<256x128xf32> -> vector<256x128xf32>
    %32 = arith.addf %31, %15 : vector<256x128xf32>
    %cst_18 = arith.constant 0.000000e+00 : f32
    %33 = vector.broadcast %cst_18 : f32 to vector<256x128xf32>
    %34 = arith.maximumf %32, %33 : vector<256x128xf32>
    %35 = arith.truncf %34 : vector<256x128xf32> to vector<256x128xbf16>
    %c0_19 = arith.constant 0 : index
    %c0_20 = arith.constant 0 : index
    %36 = vector.load %arg18[%c0_19, %c0_20] : memref<128x128xf32, #tpu.memory_space<vmem>>, vector<128x128xf32>
    %cst_21 = arith.constant dense<0.000000e+00> : vector<128x128xf32>
    %37 = tpu.matmul %28, %35, %cst_21 {dimension_numbers = #tpu.dot_dimension_numbers<[0], [0], [1], [1], [0, 1, 1, 1], [], []>} : vector<256x128xbf16>, vector<256x128xbf16>, vector<128x128xf32> -> vector<128x128xf32>
    %38 = arith.addf %36, %37 : vector<128x128xf32>
    %c0_22 = arith.constant 0 : index
    %c0_23 = arith.constant 0 : index
    %39 = vector.load %arg18[%c0_22, %c0_23] : memref<128x128xf32, #tpu.memory_space<vmem>>, vector<128x128xf32>
    tpu.vector_store %arg18[%c0_22, %c0_23], %38 {strides = array<i32>} : memref<128x128xf32, #tpu.memory_space<vmem>>, vector<128x128xf32>,
    %c0_i32_24 = arith.constant 0 : i32
    %40 = arith.cmpi eq, %arg1, %c0_i32_24 : i32
    %41 = arith.extui %40 : i1 to i32
    %c0_i32_25 = arith.constant 0 : i32
    %42 = arith.cmpi ne, %41, %c0_i32_25 : i32
    scf.if %42 {
      %c0_26 = arith.constant 0 : index
      %c0_27 = arith.constant 0 : index
      %43 = vector.load %arg17[%c0_26, %c0_27] : memref<128x128xf32, #tpu.memory_space<vmem>>, vector<128x128xf32>
      %cst_28 = arith.constant 1.000000e+00 : f32
      %44 = vector.broadcast %cst_28 : f32 to vector<128x128xf32>
      %45 = arith.mulf %44, %43 : vector<128x128xf32>
      %c0_29 = arith.constant 0 : index
      %c0_30 = arith.constant 0 : index
      %46 = vector.load %arg18[%c0_29, %c0_30] : memref<128x128xf32, #tpu.memory_space<vmem>>, vector<128x128xf32>
      %47 = arith.addf %45, %46 : vector<128x128xf32>
      %48 = arith.truncf %47 : vector<128x128xf32> to vector<128x128xbf16>
      %c0_31 = arith.constant 0 : index
      %c0_32 = arith.constant 0 : index
      %c0_33 = arith.constant 0 : index
      %49 = vector.load %arg8[%c0_31, %c0_32, %c0_33] : memref<1x128x128xbf16, #tpu.memory_space<vmem>>, vector<1x128x128xbf16>
      %50 = vector.shape_cast %49 : vector<1x128x128xbf16> to vector<128x128xbf16>
      %cst_34 = arith.constant dense<0.000000e+00> : vector<128x128xf32>
      %51 = tpu.matmul %48, %50, %cst_34 {dimension_numbers = #tpu.dot_dimension_numbers<[1], [0], [0], [1], [0, 0, 1, 1], [], []>} : vector<128x128xbf16>, vector<128x128xbf16>, vector<128x128xf32> -> vector<128x128xf32>
      %c0_35 = arith.constant 0 : index
      %c0_36 = arith.constant 0 : index
      %c0_37 = arith.constant 0 : index
      %52 = vector.load %arg9[%c0_35, %c0_36, %c0_37] : memref<1x1x128xf32, #tpu.memory_space<vmem>>, vector<1x1x128xf32>
      %53 = vector.shape_cast %52 : vector<1x1x128xf32> to vector<1x128xf32>
      %54 = vector.broadcast %53 : vector<1x128xf32> to vector<128x128xf32>
      %55 = arith.addf %51, %54 : vector<128x128xf32>
      %cst_38 = arith.constant 0.000000e+00 : f32
      %56 = vector.broadcast %cst_38 : f32 to vector<128x128xf32>
      %57 = arith.maximumf %55, %56 : vector<128x128xf32>
      %58 = arith.truncf %57 : vector<128x128xf32> to vector<128x128xbf16>
      %c0_39 = arith.constant 0 : index
      %c0_40 = arith.constant 0 : index
      %c0_41 = arith.constant 0 : index
      %59 = vector.load %arg10[%c0_39, %c0_40, %c0_41] : memref<1x128x128xbf16, #tpu.memory_space<vmem>>, vector<1x128x128xbf16>
      %60 = vector.shape_cast %59 : vector<1x128x128xbf16> to vector<128x128xbf16>
      %cst_42 = arith.constant dense<0.000000e+00> : vector<128x128xf32>
      %61 = tpu.matmul %58, %60, %cst_42 {dimension_numbers = #tpu.dot_dimension_numbers<[1], [0], [0], [1], [0, 0, 1, 1], [], []>} : vector<128x128xbf16>, vector<128x128xbf16>, vector<128x128xf32> -> vector<128x128xf32>
      %c0_43 = arith.constant 0 : index
      %c0_44 = arith.constant 0 : index
      %c0_45 = arith.constant 0 : index
      %62 = vector.load %arg11[%c0_43, %c0_44, %c0_45] : memref<1x1x128xf32, #tpu.memory_space<vmem>>, vector<1x1x128xf32>
      %63 = vector.shape_cast %62 : vector<1x1x128xf32> to vector<1x128xf32>
      %64 = vector.broadcast %63 : vector<1x128xf32> to vector<128x128xf32>
      %65 = arith.addf %61, %64 : vector<128x128xf32>
      %66 = tpu.iota {dimensions = array<i32: 1>} : vector<1x128xi32>
      %c64_i32 = arith.constant 64 : i32
      %67 = vector.broadcast %c64_i32 : i32 to vector<1x128xi32>
      %68 = arith.cmpi slt, %66, %67 : vector<1x128xi32>
      %69 = arith.extui %68 : vector<1x128xi1> to vector<1x128xi32>
      %70 = arith.sitofp %69 : vector<1x128xi32> to vector<1x128xf32>
      %71 = vector.broadcast %70 : vector<1x128xf32> to vector<128x128xf32>
      %72 = arith.mulf %65, %71 : vector<128x128xf32>
      %cst_46 = arith.constant dense<0.000000e+00> : vector<128xf32>
      %73 = vector.multi_reduction <add>, %72, %cst_46 [1] : vector<128x128xf32> to vector<128xf32>
      %74 = vector.shape_cast %73 : vector<128xf32> to vector<128x1xf32>
      %cst_47 = arith.constant 1.562500e-02 : f32
      %75 = vector.broadcast %cst_47 : f32 to vector<128x1xf32>
      %76 = arith.mulf %74, %75 : vector<128x1xf32>
      %77 = vector.broadcast %76 : vector<128x1xf32> to vector<128x128xf32>
      %78 = arith.subf %65, %77 : vector<128x128xf32>
      %79 = vector.broadcast %70 : vector<1x128xf32> to vector<128x128xf32>
      %80 = arith.mulf %78, %79 : vector<128x128xf32>
      %81 = arith.mulf %80, %80 : vector<128x128xf32>
      %cst_48 = arith.constant dense<0.000000e+00> : vector<128xf32>
      %82 = vector.multi_reduction <add>, %81, %cst_48 [1] : vector<128x128xf32> to vector<128xf32>
      %83 = vector.shape_cast %82 : vector<128xf32> to vector<128x1xf32>
      %cst_49 = arith.constant 1.562500e-02 : f32
      %84 = vector.broadcast %cst_49 : f32 to vector<128x1xf32>
      %85 = arith.mulf %83, %84 : vector<128x1xf32>
      %cst_50 = arith.constant 9.99999974E-6 : f32
      %86 = vector.broadcast %cst_50 : f32 to vector<128x1xf32>
      %87 = arith.addf %85, %86 : vector<128x1xf32>
      %88 = math.rsqrt %87 : vector<128x1xf32>
      %89 = vector.broadcast %88 : vector<128x1xf32> to vector<128x128xf32>
      %90 = arith.mulf %80, %89 : vector<128x128xf32>
      %c0_51 = arith.constant 0 : index
      %c0_52 = arith.constant 0 : index
      %c0_53 = arith.constant 0 : index
      %91 = vector.load %arg12[%c0_51, %c0_52, %c0_53] : memref<1x1x128xf32, #tpu.memory_space<vmem>>, vector<1x1x128xf32>
      %92 = vector.shape_cast %91 : vector<1x1x128xf32> to vector<1x128xf32>
      %93 = vector.broadcast %92 : vector<1x128xf32> to vector<128x128xf32>
      %94 = arith.mulf %90, %93 : vector<128x128xf32>
      %c0_54 = arith.constant 0 : index
      %c0_55 = arith.constant 0 : index
      %c0_56 = arith.constant 0 : index
      %95 = vector.load %arg13[%c0_54, %c0_55, %c0_56] : memref<1x1x128xf32, #tpu.memory_space<vmem>>, vector<1x1x128xf32>
      %96 = vector.shape_cast %95 : vector<1x1x128xf32> to vector<1x128xf32>
      %97 = vector.broadcast %96 : vector<1x128xf32> to vector<128x128xf32>
      %98 = arith.addf %94, %97 : vector<128x128xf32>
      %cst_57 = arith.constant 5.000000e-01 : f32
      %99 = vector.broadcast %cst_57 : f32 to vector<128x128xf32>
      %100 = arith.mulf %99, %98 : vector<128x128xf32>
      %cst_58 = arith.constant 0.707106769 : f32
      %101 = vector.broadcast %cst_58 : f32 to vector<128x128xf32>
      %102 = arith.mulf %98, %101 : vector<128x128xf32>
      %103 = math.erf %102 : vector<128x128xf32>
      %cst_59 = arith.constant 1.000000e+00 : f32
      %104 = vector.broadcast %cst_59 : f32 to vector<128x128xf32>
      %105 = arith.addf %104, %103 : vector<128x128xf32>
      %106 = arith.mulf %100, %105 : vector<128x128xf32>
      %107 = arith.addf %106, %43 : vector<128x128xf32>
      %c0_60 = arith.constant 0 : index
      %c0_61 = arith.constant 0 : index
      %108 = vector.load %arg17[%c0_60, %c0_61] : memref<128x128xf32, #tpu.memory_space<vmem>>, vector<128x128xf32>
      tpu.vector_store %arg17[%c0_60, %c0_61], %107 {strides = array<i32>} : memref<128x128xf32, #tpu.memory_space<vmem>>, vector<128x128xf32>,
      %c2_i32 = arith.constant 2 : i32
      %109 = arith.cmpi eq, %arg0, %c2_i32 : i32
      %110 = arith.extui %109 : i1 to i32
      %c0_i32_62 = arith.constant 0 : i32
      %111 = arith.cmpi ne, %110, %c0_i32_62 : i32
      scf.if %111 {
        %112 = arith.truncf %107 : vector<128x128xf32> to vector<128x128xbf16>
        %c0_63 = arith.constant 0 : index
        %c0_64 = arith.constant 0 : index
        %113 = vector.load %arg14[%c0_63, %c0_64] : memref<128x128xbf16, #tpu.memory_space<vmem>>, vector<128x128xbf16>
        %cst_65 = arith.constant dense<0.000000e+00> : vector<128x128xf32>
        %114 = tpu.matmul %112, %113, %cst_65 {dimension_numbers = #tpu.dot_dimension_numbers<[1], [0], [0], [1], [0, 0, 1, 1], [], []>} : vector<128x128xbf16>, vector<128x128xbf16>, vector<128x128xf32> -> vector<128x128xf32>
        %c0_66 = arith.constant 0 : index
        %c0_67 = arith.constant 0 : index
        %115 = vector.load %arg15[%c0_66, %c0_67] : memref<1x128xf32, #tpu.memory_space<vmem>>, vector<1x128xf32>
        %116 = vector.broadcast %115 : vector<1x128xf32> to vector<128x128xf32>
        %117 = arith.addf %114, %116 : vector<128x128xf32>
        %c0_68 = arith.constant 0 : index
        %c0_69 = arith.constant 0 : index
        %118 = vector.load %arg16[%c0_68, %c0_69] : memref<128x128xf32, #tpu.memory_space<vmem>>, vector<128x128xf32>
        tpu.vector_store %arg16[%c0_68, %c0_69], %117 {strides = array<i32>} : memref<128x128xf32, #tpu.memory_space<vmem>>, vector<128x128xf32>,
      } else {
      }
    } else {
    }
    return
  }
  func.func @transform_0(%arg0: i32, %arg1: i32) -> (i32, i32) {
    %c0_i32 = arith.constant 0 : i32
    %c0_i32_0 = arith.constant 0 : i32
    return %arg1, %c0_i32 : i32, i32
  }
  func.func @transform_1(%arg0: i32, %arg1: i32) -> (i32, i32) {
    %c0_i32 = arith.constant 0 : i32
    %c0_i32_0 = arith.constant 0 : i32
    return %arg1, %c0_i32 : i32, i32
  }
  func.func @transform_2(%arg0: i32, %arg1: i32) -> (i32, i32) {
    %c0_i32 = arith.constant 0 : i32
    %c0_i32_0 = arith.constant 0 : i32
    %c0_i32_1 = arith.constant 0 : i32
    return %c0_i32, %c0_i32_0 : i32, i32
  }
  func.func @transform_3(%arg0: i32, %arg1: i32) -> (i32, i32) {
    %c0_i32 = arith.constant 0 : i32
    %c0_i32_0 = arith.constant 0 : i32
    return %arg1, %c0_i32 : i32, i32
  }
  func.func @transform_4(%arg0: i32, %arg1: i32) -> (i32, i32, i32) {
    %c0_i32 = arith.constant 0 : i32
    %c0_i32_0 = arith.constant 0 : i32
    %c0_i32_1 = arith.constant 0 : i32
    return %arg0, %c0_i32, %c0_i32_0 : i32, i32, i32
  }
  func.func @transform_5(%arg0: i32, %arg1: i32) -> (i32, i32, i32) {
    %c0_i32 = arith.constant 0 : i32
    %c0_i32_0 = arith.constant 0 : i32
    %c0_i32_1 = arith.constant 0 : i32
    return %arg0, %c0_i32, %c0_i32_0 : i32, i32, i32
  }
  func.func @transform_6(%arg0: i32, %arg1: i32) -> (i32, i32, i32) {
    %c0_i32 = arith.constant 0 : i32
    %c0_i32_0 = arith.constant 0 : i32
    %c0_i32_1 = arith.constant 0 : i32
    return %arg0, %c0_i32, %c0_i32_0 : i32, i32, i32
  }
  func.func @transform_7(%arg0: i32, %arg1: i32) -> (i32, i32, i32) {
    %c0_i32 = arith.constant 0 : i32
    %c0_i32_0 = arith.constant 0 : i32
    %c0_i32_1 = arith.constant 0 : i32
    return %arg0, %c0_i32, %c0_i32_0 : i32, i32, i32
  }
  func.func @transform_8(%arg0: i32, %arg1: i32) -> (i32, i32, i32) {
    %c0_i32 = arith.constant 0 : i32
    %c0_i32_0 = arith.constant 0 : i32
    %c0_i32_1 = arith.constant 0 : i32
    return %arg0, %c0_i32, %c0_i32_0 : i32, i32, i32
  }
  func.func @transform_9(%arg0: i32, %arg1: i32) -> (i32, i32, i32) {
    %c0_i32 = arith.constant 0 : i32
    %c0_i32_0 = arith.constant 0 : i32
    %c0_i32_1 = arith.constant 0 : i32
    return %arg0, %c0_i32, %c0_i32_0 : i32, i32, i32
  }
  func.func @transform_10(%arg0: i32, %arg1: i32) -> (i32, i32, i32) {
    %c0_i32 = arith.constant 0 : i32
    %c0_i32_0 = arith.constant 0 : i32
    %c0_i32_1 = arith.constant 0 : i32
    return %arg0, %c0_i32, %c0_i32_0 : i32, i32, i32
  }
  func.func @transform_11(%arg0: i32, %arg1: i32) -> (i32, i32, i32) {
    %c0_i32 = arith.constant 0 : i32
    %c0_i32_0 = arith.constant 0 : i32
    %c0_i32_1 = arith.constant 0 : i32
    return %arg0, %c0_i32, %c0_i32_0 : i32, i32, i32
  }
  func.func @transform_12(%arg0: i32, %arg1: i32) -> (i32, i32) {
    %c0_i32 = arith.constant 0 : i32
    %c0_i32_0 = arith.constant 0 : i32
    %c0_i32_1 = arith.constant 0 : i32
    return %c0_i32, %c0_i32_0 : i32, i32
  }
  func.func @transform_13(%arg0: i32, %arg1: i32) -> (i32, i32) {
    %c0_i32 = arith.constant 0 : i32
    %c0_i32_0 = arith.constant 0 : i32
    %c0_i32_1 = arith.constant 0 : i32
    return %c0_i32, %c0_i32_0 : i32, i32
  }
  func.func @transform_14(%arg0: i32, %arg1: i32) -> (i32, i32) {
    %c0_i32 = arith.constant 0 : i32
    %c0_i32_0 = arith.constant 0 : i32
    %c0_i32_1 = arith.constant 0 : i32
    return %c0_i32, %c0_i32_0 : i32, i32
  }
}

</mosaic_0001>

<bundles_post_ra>
// kernel: gnn_forward.1
= control target key start
LH: loop header
LB: loop body
LE: loop exit
PB: predicated region body
PF: predicated region fallthrough
CT: control target
= control target key end

     0   :  { %s3920_s29 = smov 0   ;;  %s3922_s30 = smov 0   ;;  %s4922_s0 = inlined_call_operand.vmem [shape: s32[256,1], index: 0, kind: input, shape index: {}]   ;;  %s4923_s1 = inlined_call_operand.vmem [shape: s32[256,1], index: 1, kind: input, shape index: {}]   ;;  %s4924_s2 = inlined_call_operand.vmem [shape: f32[128,128], index: 2, kind: input, shape index: {}]   ;;  %s4925_s3 = inlined_call_operand.vmem [shape: bf16[256,32], index: 3, kind: input, shape index: {}]   ;;  %s4926_s4 = inlined_call_operand.vmem [shape: bf16[3,32,128], index: 4, kind: input, shape index: {}]   ;;  %s4927_s5 = inlined_call_operand.vmem [shape: f32[3,1,128], index: 5, kind: input, shape index: {}]   ;;  %s4928_s6 = inlined_call_operand.vmem [shape: bf16[3,128,128], index: 6, kind: input, shape index: {}]   ;;  %s4929_s7 = inlined_call_operand.vmem [shape: f32[3,1,128], index: 7, kind: input, shape index: {}]   ;;  %s4930_s8 = inlined_call_operand.vmem [shape: bf16[3,128,128], index: 8, kind: input, shape index: {}]   ;;  %s4931_s9 = inlined_call_operand.vmem [shape: f32[3,1,128], index: 9, kind: input, shape index: {}]   ;;  %s4932_s10 = inlined_call_operand.vmem [shape: f32[3,1,128], index: 10, kind: input, shape index: {}]   ;;  %s4933_s11 = inlined_call_operand.vmem [shape: f32[3,1,128], index: 11, kind: input, shape index: {}]   ;;  %s4934_s12 = inlined_call_operand.vmem [shape: bf16[128,128], index: 12, kind: input, shape index: {}]   ;;  %s4935_s13 = inlined_call_operand.vmem [shape: f32[1,128], index: 13, kind: input, shape index: {}]   ;;  %s4936_s14 = inlined_call_operand.vmem [shape: f32[128,128], index: 14, kind: output, shape index: {}]  }
   0x1   :  { %4940 = sst [smem:[#allocation7_spill]] %s4926_s4  ;;  %s3924_s15 = smov 0  }
   0x2   :  { %4941 = sst [smem:[#allocation8_spill]] %s4928_s6 }
   0x3   :  { %4942 = sst [smem:[#allocation9_spill]] %s4935_s13 }
   0x4   :  { %4943 = sst [smem:[#allocation10_spill]] %s4936_s14 }
   0x5 LB: > { %4944 = sst [smem:[#allocation4_spill]] %s3836_s30  ;;  %s36_s16 = sadd.s32 1, %s3836_s30  ;;  %s3840_s15 = sphi %s3924_s15, %s24_s15   ;;  %s3836_s30 = sphi %s3922_s30, %s4954_s30   ;;  %s3832_s29 = sphi %s3920_s29, %s4953_s29  }
   0x6   : > { %4945 = sst [smem:[#allocation5_spill]] %s3840_s15  ;;  %p3077_p0 = scmp.ge.s32.totalorder %s3840_s15, 1 }
   0x7   : > { %p38_p1 = scmp.ge.s32.totalorder %s36_s16, 3  ;;  %p512_p2 = scmp.lt.s32.totalorder %s3840_s15, 4 }
   0x9   : > { %s4956_s16 = smov (%p38_p1, %s36_s16), 0  ;;  %p513_p3 = pnand %p3077_p0, %p512_p2 }
   0xa   : > { %4946 = sst [smem:[#allocation6_spill]] %s4956_s16  ;;  %p611_p4 = scmp.lt.s32.totalorder (!%p513_p3), %s3832_s29, 2 }
   0xb   : > { %516 = sbr.rel (%p513_p3) target bundleno = 1751 (0x6d7), region = 76  ;;  %p642_p5 = scmp.eq.s32.totalorder (!%p513_p3), %s3832_s29, 0 }
   0xc   : > { %s4947_s4 = sld [smem:[#allocation7_spill]] (!%p513_p3)  ;;  %s4948_s6 = sld [smem:[#allocation8_spill]] (!%p513_p3) }
  0x12   : > { %s3943_s17 = scalar_select %p611_p4, %s3832_s29, 2 }
  0x13   : > { %647 = sbr.rel (!%p642_p5) target bundleno = 28 (0x1c), region = 80  ;;  %v648_v0 = vld [vmem:[%s4924_s2] sm:$0xff] (%p642_p5)  ;;  %v649_v1 = vld [vmem:[%s4924_s2 + $0x8] sm:$0xff] (%p642_p5)  ;;  %v650_v2 = vld [vmem:[%s4924_s2 + $0x10] sm:$0xff] (%p642_p5) }
  0x14   : > { %s3249_s18 = sshll.u32 %s3943_s17, 4  ;;  %s3250_s25 = sshll.u32 %s3943_s17, 6  ;;  %664 = vst [vmem:[#allocation2] sm:$0xff] (%p642_p5), %v648_v0  ;;  %665 = vst [vmem:[#allocation2 + $0x8] sm:$0xff] (%p642_p5), %v649_v1  ;;  %v651_v3 = vld [vmem:[%s4924_s2 + $0x18] sm:$0xff] (%p642_p5)  ;;  %v652_v4 = vld [vmem:[%s4924_s2 + $0x20] sm:$0xff] (%p642_p5) }
  0x15   : > { %s3953_s24 = scalar_lea.vmem %s4947_s4, %s3249_s18  ;;  %s3959_s28 = scalar_lea.vmem %s4948_s6, %s3250_s25  ;;  %666 = vst [vmem:[#allocation2 + $0x10] sm:$0xff] (%p642_p5), %v650_v2  ;;  %v653_v5 = vld [vmem:[%s4924_s2 + $0x28] sm:$0xff] (%p642_p5)  ;;  %667 = vst [vmem:[#allocation2 + $0x18] sm:$0xff] (%p642_p5), %v651_v3  ;;  %v654_v6 = vld [vmem:[%s4924_s2 + $0x30] sm:$0xff] (%p642_p5) }
  0x16   : > { %s626_s15 = scalar_lea.vmem %s4929_s7, %s3943_s17  ;;  %s3968_s19 = scalar_lea.vmem %s4930_s8, %s3250_s25  ;;  %668 = vst [vmem:[#allocation2 + $0x20] sm:$0xff] (%p642_p5), %v652_v4  ;;  %669 = vst [vmem:[#allocation2 + $0x28] sm:$0xff] (%p642_p5), %v653_v5  ;;  %v655_v7 = vld [vmem:[%s4924_s2 + $0x38] sm:$0xff] (%p642_p5)  ;;  %v656_v8 = vld [vmem:[%s4924_s2 + $0x40] sm:$0xff] (%p642_p5) }
  0x17   : > { %s634_s18 = scalar_lea.vmem %s4931_s9, %s3943_s17  ;;  %s637_s4 = scalar_lea.vmem %s4932_s10, %s3943_s17  ;;  %670 = vst [vmem:[#allocation2 + $0x30] sm:$0xff] (%p642_p5), %v654_v6  ;;  %671 = vst [vmem:[#allocation2 + $0x38] sm:$0xff] (%p642_p5), %v655_v7  ;;  %v657_v9 = vld [vmem:[%s4924_s2 + $0x48] sm:$0xff] (%p642_p5)  ;;  %v658_v10 = vld [vmem:[%s4924_s2 + $0x50] sm:$0xff] (%p642_p5) }
  0x18   : > { %s640_s6 = scalar_lea.vmem %s4933_s11, %s3943_s17  ;;  %672 = vst [vmem:[#allocation2 + $0x40] sm:$0xff] (%p642_p5), %v656_v8  ;;  %v659_v11 = vld [vmem:[%s4924_s2 + $0x58] sm:$0xff] (%p642_p5)  ;;  %673 = vst [vmem:[#allocation2 + $0x48] sm:$0xff] (%p642_p5), %v657_v9  ;;  %v660_v12 = vld [vmem:[%s4924_s2 + $0x60] sm:$0xff] (%p642_p5) }
  0x19   : > { %674 = vst [vmem:[#allocation2 + $0x50] sm:$0xff] (%p642_p5), %v658_v10  ;;  %675 = vst [vmem:[#allocation2 + $0x58] sm:$0xff] (%p642_p5), %v659_v11  ;;  %v661_v13 = vld [vmem:[%s4924_s2 + $0x68] sm:$0xff] (%p642_p5)  ;;  %v662_v14 = vld [vmem:[%s4924_s2 + $0x70] sm:$0xff] (%p642_p5) }
  0x1a   : > { %676 = vst [vmem:[#allocation2 + $0x60] sm:$0xff] %v660_v12  ;;  %677 = vst [vmem:[#allocation2 + $0x68] sm:$0xff] %v661_v13  ;;  %v663_v15 = vld [vmem:[%s4924_s2 + $0x78] sm:$0xff] }
  0x1b   : > { %678 = vst [vmem:[#allocation2 + $0x70] sm:$0xff] %v662_v14  ;;  %679 = vst [vmem:[#allocation2 + $0x78] sm:$0xff] %v663_v15 }
  0x1c PF: > { %v1048_v16 = vld [vmem:[%s4922_s0 + $0x10] sm:$0xff]  ;;  %v1046_v17 = vld [vmem:[%s4922_s0] sm:$0xff]  ;;  %v3842_v18 = vmov 0   ;;  %v1049_v19 = vld [vmem:[%s4922_s0 + $0x18] sm:$0xff]  ;;  %vm834_vm0 = vcmask 261120   ;;  %s4949_s20 = scalar_lea.vmem %s4927_s5, %s3943_s17  ;;  %p3237_p6 = scmp.ne.s32.totalorder %s3832_s29, 2 }
  0x1d   : > { %3711 = vset.pattern.permute.xlu1 %v3842_v18  ;;  %3710 = vset.pattern.permute.xlu0 %v3842_v18  ;;  %v1047_v20 = vld [vmem:[%s4922_s0 + $0x8] sm:$0xff]  ;;  %v1050_v22 = vld [vmem:[%s4922_s0 + $0x20] sm:$0xff]  ;;  %v1053_v23 = vld [vmem:[%s4922_s0 + $0x38] sm:$0xff]  ;;  %s4950_s26 = sld [smem:[#allocation9_spill]] (!%p3237_p6) }
  0x1e   : > { %1085 = vperm.xlu1 %3711, %v1048_v16   ;;  %1079 = vperm.xlu0 %3710, %v1046_v17   ;;  %v1051_v21 = vld [vmem:[%s4922_s0 + $0x28] sm:$0xff]  ;;  %v1052_v24 = vld [vmem:[%s4922_s0 + $0x30] sm:$0xff]  ;;  %v3712_v25 = vld [vmem:[%s3953_s24] sm:$0xff]  }
  0x1f   : > { %v1055_v26 = vld [vmem:[%s4922_s0 + $0x48] sm:$0xff]  ;;  %3407 = vmatprep.subr.bf16.mxu0 %v3712_v25  ;;  %v3714_v28 = vld [vmem:[%s4925_s3] sm:$0xff]   ;;  %v1057_v30 = vld [vmem:[%s4922_s0 + $0x58] sm:$0xff] }
  0x20   : > { %v3713_v27 = vld [vmem:[%s3953_s24 + $0x8] sm:$0xff]   ;;  %v1054_v29 = vld [vmem:[%s4922_s0 + $0x40] sm:$0xff]  ;;  %3408 = vmatpush3.bf16.msra.mxu0 %v3712_v25  ;;  %3411 = vmatprep.mubr.msk.bf16.mxu0 %vm834_vm0, %v3714_v28  ;;  %v1056_v31 = vld [vmem:[%s4922_s0 + $0x50] sm:$0xff] }
  0x21   : > { %3409 = vmatprep.subr.bf16.mxu0 %v3713_v27  ;;  %v3715_v32 = vld [vmem:[%s4925_s3 + $0x8] sm:$0xff]   ;;  %v3716_v33 = vld [vmem:[%s4925_s3 + $0x10] sm:$0xff]   ;;  %v1526_v34 = vld [vmem:[#allocation2] sm:$0xff] }
  0x22   : > { %1088 = vperm.xlu1 %3711, %v1049_v19   ;;  %1082 = vperm.xlu0 %3710, %v1047_v20   ;;  %v1527_v35 = vld [vmem:[#allocation2 + $0x8] sm:$0xff]  ;;  %v1058_v38 = vld [vmem:[%s4922_s0 + $0x60] sm:$0xff]  ;;  %v1528_v39 = vld [vmem:[#allocation2 + $0x10] sm:$0xff] }
  0x23   : > { %v1542_v36 = vpack.c.bf16 %v1527_v35, %v1526_v34  ;;  %v1059_v37 = vld [vmem:[%s4922_s0 + $0x68] sm:$0xff]  ;;  %v1529_v40 = vld [vmem:[#allocation2 + $0x18] sm:$0xff]  ;;  %v1060_v43 = vld [vmem:[%s4922_s0 + $0x70] sm:$0xff] }
  0x24   : > { %3410 = vmatpush3.bf16.msra.mxu0 %v3713_v27  ;;  %v1543_v41 = vpack.c.bf16 %v1529_v40, %v1528_v39  ;;  %v1061_v42 = vld [vmem:[%s4922_s0 + $0x78] sm:$0xff]  ;;  %v3718_v45 = vld [vmem:[%s4925_s3 + $0x20] sm:$0xff]   ;;  %v1531_v47 = vld [vmem:[#allocation2 + $0x28] sm:$0xff] }
  0x25   : > { %3443 = vmatprep.subr.bf16.mxu0 %v1542_v36  ;;  %v3717_v44 = vld [vmem:[%s4925_s3 + $0x18] sm:$0xff]   ;;  %v1530_v46 = vld [vmem:[#allocation2 + $0x20] sm:$0xff]  ;;  %v1063_v49 = vld [vmem:[%s4922_s0 + $0x88] sm:$0xff] }
  0x26   : > { %1094 = vperm.xlu1 %3711, %v1051_v21   ;;  %1091 = vperm.xlu0 %3710, %v1050_v22   ;;  %v1544_v48 = vpack.c.bf16 %v1531_v47, %v1530_v46  ;;  %v1062_v50 = vld [vmem:[%s4922_s0 + $0x80] sm:$0xff]  ;;  %v1532_v51 = vld [vmem:[#allocation2 + $0x30] sm:$0xff]  ;;  %v1533_v52 = vld [vmem:[#allocation2 + $0x38] sm:$0xff] }
  0x27   : > { %3412 = vmatmul.mubr.msk.bf16.vlgmr.msra.gmra.mrb[0].mxu0 %vm834_vm0, %v3715_v32  ;;  %v1545_v53 = vpack.c.bf16 %v1533_v52, %v1532_v51  ;;  %v1065_v54 = vld [vmem:[%s4922_s0 + $0x98] sm:$0xff]  ;;  %v1064_v55 = vld [vmem:[%s4922_s0 + $0x90] sm:$0xff]  ;;  %v3719_v56 = vld [vmem:[%s4925_s3 + $0x28] sm:$0xff]  }
  0x28   : > { %3415 = vmatprep.mubr.msk.bf16.mxu0 %vm834_vm0, %v3716_v33  ;;  %3444 = vmatpush3.bf16.msra.mxu0 %v1542_v36  ;;  %v3720_v57 = vld [vmem:[%s4925_s3 + $0x30] sm:$0xff]   ;;  %v1534_v58 = vld [vmem:[#allocation2 + $0x40] sm:$0xff]  ;;  %v1535_v59 = vld [vmem:[#allocation2 + $0x48] sm:$0xff] }
  0x29   : > { %3445 = vmatprep.subr.bf16.mxu0 %v1543_v41  ;;  %v1546_v60 = vpack.c.bf16 %v1535_v59, %v1534_v58  ;;  %v1067_v61 = vld [vmem:[%s4922_s0 + $0xa8] sm:$0xff]  ;;  %v1066_v62 = vld [vmem:[%s4922_s0 + $0xa0] sm:$0xff]  ;;  %v1536_v63 = vld [vmem:[#allocation2 + $0x50] sm:$0xff]  ;;  %v1044_v59 = vlaneseq }
  0x2a   : > { %1100 = vperm.xlu1 %3711, %v1053_v23   ;;  %1097 = vperm.xlu0 %3710, %v1052_v24   ;;  %v1537_v0 = vld [vmem:[#allocation2 + $0x58] sm:$0xff]  ;;  %v1068_v2 = vld [vmem:[%s4922_s0 + $0xb0] sm:$0xff]  ;;  %v3722_v5 = vld [vmem:[%s4925_s3 + $0x40] sm:$0xff]  }
  0x2b   : > { %v1069_v1 = vld [vmem:[%s4922_s0 + $0xb8] sm:$0xff]  ;;  %v1547_v3 = vpack.c.bf16 %v1537_v0, %v1536_v63  ;;  %v1538_v6 = vld [vmem:[#allocation2 + $0x60] sm:$0xff]  ;;  %v1539_v7 = vld [vmem:[#allocation2 + $0x68] sm:$0xff] }
  0x2c   : > { %3446 = vmatpush3.bf16.msra.mxu0 %v1543_v41  ;;  %v3721_v4 = vld [vmem:[%s4925_s3 + $0x38] sm:$0xff]   ;;  %v1548_v8 = vpack.c.bf16 %v1539_v7, %v1538_v6  ;;  %v1540_v9 = vld [vmem:[#allocation2 + $0x70] sm:$0xff]  ;;  %v1071_v11 = vld [vmem:[%s4922_s0 + $0xc8] sm:$0xff] }
  0x2d   : > { %3447 = vmatprep.subr.bf16.mxu0 %v1544_v48  ;;  %v1541_v10 = vld [vmem:[#allocation2 + $0x78] sm:$0xff]  ;;  %v1070_v12 = vld [vmem:[%s4922_s0 + $0xc0] sm:$0xff]  ;;  %v1072_v15 = vld [vmem:[%s4922_s0 + $0xd0] sm:$0xff] }
  0x2e   : > { %1106 = vperm.xlu1 %3711, %v1055_v26   ;;  %1103 = vperm.xlu0 %3710, %v1054_v29   ;;  %v1549_v13 = vpack.c.bf16 %v1541_v10, %v1540_v9  ;;  %v1073_v14 = vld [vmem:[%s4922_s0 + $0xd8] sm:$0xff]  ;;  %v3723_v16 = vld [vmem:[%s4925_s3 + $0x48] sm:$0xff]   ;;  %v3724_v17 = vld [vmem:[%s4925_s3 + $0x50] sm:$0xff]  }
  0x2f   : > { %3416 = vmatmul.mubr.msk.bf16.gmra.mrb[4].mxu0 %vm834_vm0, %v3717_v44  ;;  %v1075_v18 = vld [vmem:[%s4922_s0 + $0xe8] sm:$0xff]  ;;  %v1074_v19 = vld [vmem:[%s4922_s0 + $0xe0] sm:$0xff]  ;;  %v1077_v20 = vld [vmem:[%s4922_s0 + $0xf8] sm:$0xff] }
  0x30   : > { %3419 = vmatprep.mubr.msk.bf16.mxu0 %vm834_vm0, %v3718_v45  ;;  %3448 = vmatpush3.bf16.msra.mxu0 %v1544_v48  ;;  %v1076_v21 = vld [vmem:[%s4922_s0 + $0xf0] sm:$0xff]  ;;  %v3725_v22 = vld [vmem:[%s4925_s3 + $0x58] sm:$0xff]   ;;  %v3726_v23 = vld [vmem:[%s4925_s3 + $0x60] sm:$0xff]  }
  0x31   : > { %3449 = vmatprep.subr.bf16.mxu0 %v1545_v53  ;;  %v1303_v24 = vld [vmem:[%s4923_s1 + $0x88] sm:$0xff]  ;;  %v1302_v25 = vld [vmem:[%s4923_s1 + $0x80] sm:$0xff]  ;;  %v3728_v29 = vld [vmem:[%s4925_s3 + $0x70] sm:$0xff]  }
  0x32   : > { %1112 = vperm.xlu1 %3711, %v1057_v30   ;;  %1109 = vperm.xlu0 %3710, %v1056_v31   ;;  %v1287_v26 = vld [vmem:[%s4923_s1 + $0x8] sm:$0xff]  ;;  %v1286_v27 = vld [vmem:[%s4923_s1] sm:$0xff]  ;;  %v1305_v30 = vld [vmem:[%s4923_s1 + $0x98] sm:$0xff] }
  0x33   : > { %v3727_v28 = vld [vmem:[%s4925_s3 + $0x68] sm:$0xff]   ;;  %v1304_v31 = vld [vmem:[%s4923_s1 + $0x90] sm:$0xff]  ;;  %v1289_v32 = vld [vmem:[%s4923_s1 + $0x18] sm:$0xff] }
  0x34   : > { %3450 = vmatpush3.bf16.msra.mxu0 %v1545_v53  ;;  %v1288_v33 = vld [vmem:[%s4923_s1 + $0x10] sm:$0xff]  ;;  %v3729_v34 = vld [vmem:[%s4925_s3 + $0x78] sm:$0xff]   ;;  %v1307_v35 = vld [vmem:[%s4923_s1 + $0xa8] sm:$0xff] }
  0x35   : > { %3451 = vmatprep.subr.bf16.mxu0 %v1546_v60  ;;  %v1306_v36 = vld [vmem:[%s4923_s1 + $0xa0] sm:$0xff]  ;;  %v1309_v39 = vld [vmem:[%s4923_s1 + $0xb8] sm:$0xff]  ;;  %v1308_v40 = vld [vmem:[%s4923_s1 + $0xb0] sm:$0xff] }
  0x36   : > { %1118 = vperm.xlu1 %3711, %v1059_v37   ;;  %1115 = vperm.xlu0 %3710, %v1058_v38   ;;  %v1291_v37 = vld [vmem:[%s4923_s1 + $0x28] sm:$0xff]  ;;  %v1290_v38 = vld [vmem:[%s4923_s1 + $0x20] sm:$0xff]  ;;  %v1293_v41 = vld [vmem:[%s4923_s1 + $0x38] sm:$0xff] }
  0x37   : > { %3420 = vmatmul.mubr.msk.bf16.gmra.mrb[8].mxu0 %vm834_vm0, %v3719_v56  ;;  %v1310_v44 = vld [vmem:[%s4923_s1 + $0xc0] sm:$0xff]  ;;  %v1295_v45 = vld [vmem:[%s4923_s1 + $0x48] sm:$0xff]  ;;  %v1313_v47 = vld [vmem:[%s4923_s1 + $0xd8] sm:$0xff] }
  0x38   : > { %3423 = vmatprep.mubr.msk.bf16.mxu0 %vm834_vm0, %v3720_v57  ;;  %3452 = vmatpush3.bf16.msra.mxu0 %v1546_v60  ;;  %v1294_v46 = vld [vmem:[%s4923_s1 + $0x40] sm:$0xff]  ;;  %v1312_v48 = vld [vmem:[%s4923_s1 + $0xd0] sm:$0xff]  ;;  %v1315_v51 = vld [vmem:[%s4923_s1 + $0xe8] sm:$0xff] }
  0x39   : > { %3453 = vmatprep.subr.bf16.mxu0 %v1547_v3  ;;  %v1314_v52 = vld [vmem:[%s4923_s1 + $0xe0] sm:$0xff]  ;;  %v1299_v53 = vld [vmem:[%s4923_s1 + $0x68] sm:$0xff]  ;;  %v1316_v56 = vld [vmem:[%s4923_s1 + $0xf0] sm:$0xff] }
  0x3a   : > { %1124 = vperm.xlu1 %3711, %v1061_v42   ;;  %1121 = vperm.xlu0 %3710, %v1060_v43   ;;  %v1292_v42 = vld [vmem:[%s4923_s1 + $0x30] sm:$0xff]  ;;  %v1311_v43 = vld [vmem:[%s4923_s1 + $0xc8] sm:$0xff]  ;;  %v1301_v57 = vld [vmem:[%s4923_s1 + $0x78] sm:$0xff] }
  0x3b   : > { %v1300_v58 = vld [vmem:[%s4923_s1 + $0x70] sm:$0xff] }
  0x3c   : > { %3454 = vmatpush3.bf16.msra.mxu0 %v1547_v3 }
  0x3d   : > { %3455 = vmatprep.subr.bf16.mxu0 %v1548_v8 }
  0x3e   : > { %1130 = vperm.xlu1 %3711, %v1063_v49   ;;  %1127 = vperm.xlu0 %3710, %v1062_v50   ;;  %v1297_v49 = vld [vmem:[%s4923_s1 + $0x58] sm:$0xff]  ;;  %v1296_v50 = vld [vmem:[%s4923_s1 + $0x50] sm:$0xff] }
  0x3f   : > { %3424 = vmatmul.mubr.msk.bf16.gmra.mrb[12].mxu0 %vm834_vm0, %v3721_v4 }
  0x40   : > { %3427 = vmatprep.mubr.msk.bf16.mxu0 %vm834_vm0, %v3722_v5  ;;  %3456 = vmatpush3.bf16.msra.mxu0 %v1548_v8 }
  0x41   : > { %3457 = vmatprep.subr.bf16.mxu0 %v1549_v13 }
  0x42   : > { %1136 = vperm.xlu1 %3711, %v1065_v54   ;;  %1133 = vperm.xlu0 %3710, %v1064_v55   ;;  %v1298_v54 = vld [vmem:[%s4923_s1 + $0x60] sm:$0xff]  ;;  %v1317_v55 = vld [vmem:[%s4923_s1 + $0xf8] sm:$0xff] }
  0x44   : > { %3458 = vmatpush3.bf16.msra.mxu0 %v1549_v13 }
  0x46   : > { %1142 = vperm.xlu1 %3711, %v1067_v61   ;;  %1139 = vperm.xlu0 %3710, %v1066_v62   ;;  %v4288_v62 = vand.u32 127, %v1044_v59 }
  0x47   : > { %3428 = vmatmul.mubr.msk.bf16.gmra.mrb[16].mxu0 %vm834_vm0, %v3723_v16 }
  0x48   : > { %3431 = vmatprep.mubr.msk.bf16.mxu0 %vm834_vm0, %v3724_v17 }
  0x4a   : > { %1148 = vperm.xlu1 %3711, %v1069_v1   ;;  %1145 = vperm.xlu0 %3710, %v1068_v2   ;;  %v3843_v1 = vmov 1.0|1.0  }
  0x4e   : > { %1154 = vperm.xlu1 %3711, %v1071_v11   ;;  %1151 = vperm.xlu0 %3710, %v1070_v12  }
  0x4f   : > { %3432 = vmatmul.mubr.msk.bf16.gmra.mrb[20].mxu0 %vm834_vm0, %v3725_v22 }
  0x50   : > { %3435 = vmatprep.mubr.msk.bf16.mxu0 %vm834_vm0, %v3726_v23 }
  0x52   : > { %1160 = vperm.xlu1 %3711, %v1073_v14   ;;  %1157 = vperm.xlu0 %3710, %v1072_v15  }
  0x56   : > { %1166 = vperm.xlu1 %3711, %v1075_v18   ;;  %1163 = vperm.xlu0 %3710, %v1074_v19  }
  0x57   : > { %3436 = vmatmul.mubr.msk.bf16.gmra.mrb[24].mxu0 %vm834_vm0, %v3727_v28 }
  0x58   : > { %3439 = vmatprep.mubr.msk.bf16.mxu0 %vm834_vm0, %v3728_v29 }
  0x5a   : > { %1172 = vperm.xlu1 %3711, %v1077_v20   ;;  %1169 = vperm.xlu0 %3710, %v1076_v21  }
  0x5e   : > { %1370 = vperm.xlu1 %3711, %v1303_v24   ;;  %1367 = vperm.xlu0 %3710, %v1302_v25  }
  0x5f   : > { %3440 = vmatmul.mubr.msk.bf16.gmra.mrb[28].mxu0 %vm834_vm0, %v3729_v34 }
  0x62   : > { %1322 = vperm.xlu1 %3711, %v1287_v26   ;;  %1319 = vperm.xlu0 %3710, %v1286_v27  }
  0x66   : > { %1376 = vperm.xlu1 %3711, %v1305_v30   ;;  %1373 = vperm.xlu0 %3710, %v1304_v31  }
  0x6a   : > { %1328 = vperm.xlu1 %3711, %v1289_v32   ;;  %1325 = vperm.xlu0 %3710, %v1288_v33   ;;  %v3844_v32 = vmov 0.0  }
  0x6e   : > { %1382 = vperm.xlu1 %3711, %v1307_v35   ;;  %1379 = vperm.xlu0 %3710, %v1306_v36  }
  0x72   : > { %1334 = vperm.xlu1 %3711, %v1291_v37   ;;  %1331 = vperm.xlu0 %3710, %v1290_v38  }
  0x76   : > { %1388 = vperm.xlu1 %3711, %v1309_v39   ;;  %1385 = vperm.xlu0 %3710, %v1308_v40  }
  0x7a   : > { %1340 = vperm.xlu1 %3711, %v1293_v41   ;;  %1337 = vperm.xlu0 %3710, %v1292_v42  }
  0x7e   : > { %1394 = vperm.xlu1 %3711, %v1311_v43   ;;  %1391 = vperm.xlu0 %3710, %v1310_v44  }
  0x82   : > { %1346 = vperm.xlu1 %3711, %v1295_v45   ;;  %1343 = vperm.xlu0 %3710, %v1294_v46  }
  0x86   : > { %1400 = vperm.xlu1 %3711, %v1313_v47   ;;  %1397 = vperm.xlu0 %3710, %v1312_v48  }
  0x8a   : > { %1352 = vperm.xlu1 %3711, %v1297_v49   ;;  %1349 = vperm.xlu0 %3710, %v1296_v50  }
  0x8e   : > { %1406 = vperm.xlu1 %3711, %v1315_v51   ;;  %1403 = vperm.xlu0 %3710, %v1314_v52  }
  0x92   : > { %1358 = vperm.xlu1 %3711, %v1299_v53   ;;  %1355 = vperm.xlu0 %3710, %v1298_v54  }
  0x96   : > { %1412 = vperm.xlu1 %3711, %v1317_v55   ;;  %1409 = vperm.xlu0 %3710, %v1316_v56  }
  0x9a   : > { %1364 = vperm.xlu1 %3711, %v1301_v57   ;;  %1361 = vperm.xlu0 %3710, %v1300_v58  }
  0x9d   : > { %v1086_v60 = vpop.permute.xlu1 %1085  ;;  %v1080_v61 = vpop.permute.xlu0 %1079 }
  0x9e   : > { %vm1176_vm1 = vcmp.eq.s32.totalorder %v4288_v62, %v1086_v60  ;;  %vm1174_vm4 = vcmp.eq.s32.totalorder %v4288_v62, %v1080_v61 }
  0xa1   : > { %v1089_v63 = vpop.permute.xlu1 %1088  ;;  %v1083_v0 = vpop.permute.xlu0 %1082 }
  0xa2   : > { %vm1177_vm2 = vcmp.eq.s32.totalorder %v4288_v62, %v1089_v63  ;;  %vm1175_vm3 = vcmp.eq.s32.totalorder %v4288_v62, %v1083_v0 }
  0xa3   : > { %vm3186_vm5 = vmpackc.low %vm1177_vm2, %vm1176_vm1 }
  0xa4   : > { %vm3184_vm6 = vmpackc.low %vm1175_vm3, %vm1174_vm4 }
  0xa5   : > { %3459 = vmatprep.mubr.msk.bf16.mxu0 %vm3184_vm6, %v3843_v1  ;;  %v1095_v2 = vpop.permute.xlu1 %1094  ;;  %v1092_v3 = vpop.permute.xlu0 %1091 }
  0xa6   : > { %vm1179_vm7 = vcmp.eq.s32.totalorder %v4288_v62, %v1095_v2  ;;  %vm1178_vm8 = vcmp.eq.s32.totalorder %v4288_v62, %v1092_v3  ;;  %3460 = vmatmul.mubr.msk.bf16.vlgmr.msra.gmra.mrb[0].mxu0 %vm3186_vm5, %v3843_v1 }
  0xa7   : > { %vm3188_vm9 = vmpackc.low %vm1179_vm7, %vm1178_vm8 }
  0xa8   : > { %3463 = vmatprep.mubr.msk.bf16.mxu0 %vm3188_vm9, %v3843_v1 }
  0xa9   : > { %v1101_v4 = vpop.permute.xlu1 %1100  ;;  %v1098_v5 = vpop.permute.xlu0 %1097 }
  0xaa   : > { %vm1181_vm10 = vcmp.eq.s32.totalorder %v4288_v62, %v1101_v4  ;;  %vm1180_vm11 = vcmp.eq.s32.totalorder %v4288_v62, %v1098_v5 }
  0xab   : > { %vm3190_vm12 = vmpackc.low %vm1181_vm10, %vm1180_vm11 }
  0xad   : > { %v1107_v6 = vpop.permute.xlu1 %1106  ;;  %v1104_v7 = vpop.permute.xlu0 %1103 }
  0xae   : > { %vm1183_vm13 = vcmp.eq.s32.totalorder %v4288_v62, %v1107_v6  ;;  %vm1182_vm14 = vcmp.eq.s32.totalorder %v4288_v62, %v1104_v7  ;;  %3464 = vmatmul.mubr.msk.bf16.gmra.mrb[4].mxu0 %vm3190_vm12, %v3843_v1 }
  0xaf   : > { %vm3192_vm15 = vmpackc.low %vm1183_vm13, %vm1182_vm14 }
  0xb0   : > { %3467 = vmatprep.mubr.msk.bf16.mxu0 %vm3192_vm15, %v3843_v1 }
  0xb1   : > { %v1113_v8 = vpop.permute.xlu1 %1112  ;;  %v1110_v9 = vpop.permute.xlu0 %1109 }
  0xb2   : > { %vm1185_vm0 = vcmp.eq.s32.totalorder %v4288_v62, %v1113_v8  ;;  %vm1184_vm1 = vcmp.eq.s32.totalorder %v4288_v62, %v1110_v9 }
  0xb3   : > { %vm3194_vm2 = vmpackc.low %vm1185_vm0, %vm1184_vm1 }
  0xb5   : > { %v1119_v10 = vpop.permute.xlu1 %1118  ;;  %v1116_v11 = vpop.permute.xlu0 %1115 }
  0xb6   : > { %vm1187_vm3 = vcmp.eq.s32.totalorder %v4288_v62, %v1119_v10  ;;  %vm1186_vm4 = vcmp.eq.s32.totalorder %v4288_v62, %v1116_v11  ;;  %3468 = vmatmul.mubr.msk.bf16.gmra.mrb[8].mxu0 %vm3194_vm2, %v3843_v1 }
  0xb7   : > { %vm3196_vm5 = vmpackc.low %vm1187_vm3, %vm1186_vm4 }
  0xb8   : > { %3471 = vmatprep.mubr.msk.bf16.mxu0 %vm3196_vm5, %v3843_v1 }
  0xb9   : > { %v1125_v12 = vpop.permute.xlu1 %1124  ;;  %v1122_v13 = vpop.permute.xlu0 %1121 }
  0xba   : > { %vm1189_vm6 = vcmp.eq.s32.totalorder %v4288_v62, %v1125_v12  ;;  %vm1188_vm7 = vcmp.eq.s32.totalorder %v4288_v62, %v1122_v13 }
  0xbb   : > { %vm3198_vm8 = vmpackc.low %vm1189_vm6, %vm1188_vm7 }
  0xbd   : > { %v1131_v14 = vpop.permute.xlu1 %1130  ;;  %v1128_v15 = vpop.permute.xlu0 %1127 }
  0xbe   : > { %vm1191_vm9 = vcmp.eq.s32.totalorder %v4288_v62, %v1131_v14  ;;  %vm1190_vm10 = vcmp.eq.s32.totalorder %v4288_v62, %v1128_v15  ;;  %3472 = vmatmul.mubr.msk.bf16.gmra.mrb[12].mxu0 %vm3198_vm8, %v3843_v1 }
  0xbf   : > { %vm3200_vm11 = vmpackc.low %vm1191_vm9, %vm1190_vm10 }
  0xc0   : > { %3475 = vmatprep.mubr.msk.bf16.mxu0 %vm3200_vm11, %v3843_v1 }
  0xc1   : > { %v1137_v16 = vpop.permute.xlu1 %1136  ;;  %v1134_v17 = vpop.permute.xlu0 %1133 }
  0xc2   : > { %vm1193_vm12 = vcmp.eq.s32.totalorder %v4288_v62, %v1137_v16  ;;  %vm1192_vm13 = vcmp.eq.s32.totalorder %v4288_v62, %v1134_v17 }
  0xc3   : > { %vm3202_vm14 = vmpackc.low %vm1193_vm12, %vm1192_vm13 }
  0xc5   : > { %v1143_v18 = vpop.permute.xlu1 %1142  ;;  %v1140_v19 = vpop.permute.xlu0 %1139 }
  0xc6   : > { %vm1195_vm15 = vcmp.eq.s32.totalorder %v4288_v62, %v1143_v18  ;;  %vm1194_vm0 = vcmp.eq.s32.totalorder %v4288_v62, %v1140_v19  ;;  %3476 = vmatmul.mubr.msk.bf16.gmra.mrb[16].mxu0 %vm3202_vm14, %v3843_v1 }
  0xc7   : > { %vm3204_vm1 = vmpackc.low %vm1195_vm15, %vm1194_vm0 }
  0xc8   : > { %3479 = vmatprep.mubr.msk.bf16.mxu0 %vm3204_vm1, %v3843_v1 }
  0xc9   : > { %v1149_v20 = vpop.permute.xlu1 %1148  ;;  %v1146_v21 = vpop.permute.xlu0 %1145 }
  0xca   : > { %vm1197_vm2 = vcmp.eq.s32.totalorder %v4288_v62, %v1149_v20  ;;  %vm1196_vm3 = vcmp.eq.s32.totalorder %v4288_v62, %v1146_v21 }
  0xcb   : > { %vm3206_vm4 = vmpackc.low %vm1197_vm2, %vm1196_vm3 }
  0xcd   : > { %v1155_v22 = vpop.permute.xlu1 %1154  ;;  %v1152_v23 = vpop.permute.xlu0 %1151 }
  0xce   : > { %vm1199_vm5 = vcmp.eq.s32.totalorder %v4288_v62, %v1155_v22  ;;  %vm1198_vm6 = vcmp.eq.s32.totalorder %v4288_v62, %v1152_v23  ;;  %3480 = vmatmul.mubr.msk.bf16.gmra.mrb[20].mxu0 %vm3206_vm4, %v3843_v1 }
  0xcf   : > { %vm3208_vm7 = vmpackc.low %vm1199_vm5, %vm1198_vm6 }
  0xd0   : > { %3483 = vmatprep.mubr.msk.bf16.mxu0 %vm3208_vm7, %v3843_v1 }
  0xd1   : > { %v1161_v24 = vpop.permute.xlu1 %1160  ;;  %v1158_v25 = vpop.permute.xlu0 %1157 }
  0xd2   : > { %vm1201_vm8 = vcmp.eq.s32.totalorder %v4288_v62, %v1161_v24  ;;  %vm1200_vm9 = vcmp.eq.s32.totalorder %v4288_v62, %v1158_v25 }
  0xd3   : > { %vm3210_vm10 = vmpackc.low %vm1201_vm8, %vm1200_vm9 }
  0xd5   : > { %v1167_v26 = vpop.permute.xlu1 %1166  ;;  %v1164_v27 = vpop.permute.xlu0 %1163 }
  0xd6   : > { %vm1203_vm11 = vcmp.eq.s32.totalorder %v4288_v62, %v1167_v26  ;;  %vm1202_vm12 = vcmp.eq.s32.totalorder %v4288_v62, %v1164_v27  ;;  %3484 = vmatmul.mubr.msk.bf16.gmra.mrb[24].mxu0 %vm3210_vm10, %v3843_v1 }
  0xd7   : > { %vm3212_vm13 = vmpackc.low %vm1203_vm11, %vm1202_vm12 }
  0xd8   : > { %3487 = vmatprep.mubr.msk.bf16.mxu0 %vm3212_vm13, %v3843_v1 }
  0xd9   : > { %v1173_v28 = vpop.permute.xlu1 %1172  ;;  %v1170_v29 = vpop.permute.xlu0 %1169 }
  0xda   : > { %vm1205_vm14 = vcmp.eq.s32.totalorder %v4288_v62, %v1173_v28  ;;  %vm1204_vm15 = vcmp.eq.s32.totalorder %v4288_v62, %v1170_v29 }
  0xdb   : > { %vm3214_vm0 = vmpackc.low %vm1205_vm14, %vm1204_vm15 }
  0xdd   : > { %v1371_v30 = vpop.permute.xlu1 %1370  ;;  %v1368_v31 = vpop.permute.xlu0 %1367 }
  0xde   : > { %vm1431_vm1 = vcmp.eq.s32.totalorder %v4288_v62, %v1371_v30  ;;  %vm1430_vm2 = vcmp.eq.s32.totalorder %v4288_v62, %v1368_v31  ;;  %3488 = vmatmul.mubr.msk.bf16.gmra.mrb[28].mxu0 %vm3214_vm0, %v3843_v1 }
  0xdf   : > { %v3169_v33 = vsel %vm1431_vm1, 1.0, %v3844_v32  ;;  %v3168_v34 = vsel %vm1430_vm2, 1.0, %v3844_v32 }
  0xe0   : > { %v1518_v35 = vpack.c.bf16 %v3169_v33, %v3168_v34 }
  0xe1   : > { %v1323_v36 = vpop.permute.xlu1 %1322  ;;  %v1320_v37 = vpop.permute.xlu0 %1319 }
  0xe2   : > { %vm1415_vm3 = vcmp.eq.s32.totalorder %v4288_v62, %v1323_v36  ;;  %vm1414_vm4 = vcmp.eq.s32.totalorder %v4288_v62, %v1320_v37  ;;  %1791 = vxpose.xlu0.c.b16.start [1/8] %v1518_v35, 128 }
  0xe3   : > { %v3153_v38 = vsel %vm1415_vm3, 1.0, %v3844_v32  ;;  %v3152_v39 = vsel %vm1414_vm4, 1.0, %v3844_v32 }
  0xe4   : > { %v1510_v40 = vpack.c.bf16 %v3153_v38, %v3152_v39 }
  0xe5   : > { %v1377_v41 = vpop.permute.xlu1 %1376  ;;  %v1374_v42 = vpop.permute.xlu0 %1373 }
  0xe6   : > { %vm1433_vm5 = vcmp.eq.s32.totalorder %v4288_v62, %v1377_v41  ;;  %vm1432_vm6 = vcmp.eq.s32.totalorder %v4288_v62, %v1374_v42  ;;  %1775 = vxpose.xlu1.c.b16.start [1/8] %v1510_v40, 128 }
  0xe7   : > { %v3171_v43 = vsel %vm1433_vm5, 1.0, %v3844_v32  ;;  %v3170_v44 = vsel %vm1432_vm6, 1.0, %v3844_v32 }
  0xe8   : > { %v1519_v45 = vpack.c.bf16 %v3171_v43, %v3170_v44 }
  0xe9   : > { %v1329_v46 = vpop.permute.xlu1 %1328  ;;  %v1326_v47 = vpop.permute.xlu0 %1325 }
  0xea   : > { %vm1417_vm7 = vcmp.eq.s32.totalorder %v4288_v62, %v1329_v46  ;;  %vm1416_vm8 = vcmp.eq.s32.totalorder %v4288_v62, %v1326_v47  ;;  %1792 = vxpose.xlu0.c.b16.cont [2/8] %v1519_v45, 128 }
  0xeb   : > { %v3155_v48 = vsel %vm1417_vm7, 1.0, %v3844_v32  ;;  %v3154_v49 = vsel %vm1416_vm8, 1.0, %v3844_v32 }
  0xec   : > { %v1511_v50 = vpack.c.bf16 %v3155_v48, %v3154_v49 }
  0xed   : > { %v1383_v51 = vpop.permute.xlu1 %1382  ;;  %v1380_v52 = vpop.permute.xlu0 %1379 }
  0xee   : > { %vm1435_vm9 = vcmp.eq.s32.totalorder %v4288_v62, %v1383_v51  ;;  %vm1434_vm10 = vcmp.eq.s32.totalorder %v4288_v62, %v1380_v52  ;;  %1776 = vxpose.xlu1.c.b16.cont [2/8] %v1511_v50, 128  ;;  %v4407_v51 = vld [vmem:[%s4949_s20] ss:$0 sm:$0xff] }
  0xef   : > { %v3173_v53 = vsel %vm1435_vm9, 1.0, %v3844_v32  ;;  %v3172_v54 = vsel %vm1434_vm10, 1.0, %v3844_v32 }
  0xf0   : > { %v1520_v55 = vpack.c.bf16 %v3173_v53, %v3172_v54 }
  0xf1   : > { %v1335_v56 = vpop.permute.xlu1 %1334  ;;  %v1332_v57 = vpop.permute.xlu0 %1331 }
  0xf2   : > { %vm1419_vm11 = vcmp.eq.s32.totalorder %v4288_v62, %v1335_v56  ;;  %vm1418_vm12 = vcmp.eq.s32.totalorder %v4288_v62, %v1332_v57  ;;  %1793 = vxpose.xlu0.c.b16.cont [3/8] %v1520_v55, 128 }
  0xf3   : > { %v3157_v58 = vsel %vm1419_vm11, 1.0, %v3844_v32  ;;  %v3156_v59 = vsel %vm1418_vm12, 1.0, %v3844_v32 }
  0xf4   : > { %v1512_v60 = vpack.c.bf16 %v3157_v58, %v3156_v59 }
  0xf5   : > { %v1389_v61 = vpop.permute.xlu1 %1388  ;;  %v1386_v63 = vpop.permute.xlu0 %1385 }
  0xf6   : > { %vm1437_vm13 = vcmp.eq.s32.totalorder %v4288_v62, %v1389_v61  ;;  %vm1436_vm14 = vcmp.eq.s32.totalorder %v4288_v62, %v1386_v63  ;;  %1777 = vxpose.xlu1.c.b16.cont [3/8] %v1512_v60, 128 }
  0xf7   : > { %v3175_v0 = vsel %vm1437_vm13, 1.0, %v3844_v32  ;;  %v3174_v1 = vsel %vm1436_vm14, 1.0, %v3844_v32 }
  0xf8   : > { %v1521_v2 = vpack.c.bf16 %v3175_v0, %v3174_v1 }
  0xf9   : > { %v1341_v3 = vpop.permute.xlu1 %1340  ;;  %v1338_v4 = vpop.permute.xlu0 %1337 }
  0xfa   : > { %vm1421_vm15 = vcmp.eq.s32.totalorder %v4288_v62, %v1341_v3  ;;  %vm1420_vm0 = vcmp.eq.s32.totalorder %v4288_v62, %v1338_v4  ;;  %1794 = vxpose.xlu0.c.b16.cont [4/8] %v1521_v2, 128 }
  0xfb   : > { %v3159_v5 = vsel %vm1421_vm15, 1.0, %v3844_v32  ;;  %v3158_v6 = vsel %vm1420_vm0, 1.0, %v3844_v32 }
  0xfc   : > { %v1513_v7 = vpack.c.bf16 %v3159_v5, %v3158_v6 }
  0xfd   : > { %v1395_v8 = vpop.permute.xlu1 %1394  ;;  %v1392_v9 = vpop.permute.xlu0 %1391 }
  0xfe   : > { %vm1439_vm1 = vcmp.eq.s32.totalorder %v4288_v62, %v1395_v8  ;;  %vm1438_vm2 = vcmp.eq.s32.totalorder %v4288_v62, %v1392_v9  ;;  %1778 = vxpose.xlu1.c.b16.cont [4/8] %v1513_v7, 128 }
  0xff   : > { %v3177_v10 = vsel %vm1439_vm1, 1.0, %v3844_v32  ;;  %v3176_v11 = vsel %vm1438_vm2, 1.0, %v3844_v32  ;;  %vm2355_vm1 = vcmp.lt.s32.totalorder %v4288_v62, 64 }
 0x100   : > { %v1522_v12 = vpack.c.bf16 %v3177_v10, %v3176_v11 }
 0x101   : > { %v1347_v13 = vpop.permute.xlu1 %1346  ;;  %v1344_v14 = vpop.permute.xlu0 %1343 }
 0x102   : > { %vm1423_vm3 = vcmp.eq.s32.totalorder %v4288_v62, %v1347_v13  ;;  %vm1422_vm4 = vcmp.eq.s32.totalorder %v4288_v62, %v1344_v14  ;;  %1795 = vxpose.xlu0.c.b16.cont [5/8] %v1522_v12, 128 }
 0x103   : > { %v3161_v15 = vsel %vm1423_vm3, 1.0, %v3844_v32  ;;  %v3160_v16 = vsel %vm1422_vm4, 1.0, %v3844_v32 }
 0x104   : > { %v1514_v17 = vpack.c.bf16 %v3161_v15, %v3160_v16 }
 0x105   : > { %v1401_v18 = vpop.permute.xlu1 %1400  ;;  %v1398_v19 = vpop.permute.xlu0 %1397 }
 0x106   : > { %vm1441_vm5 = vcmp.eq.s32.totalorder %v4288_v62, %v1401_v18  ;;  %vm1440_vm6 = vcmp.eq.s32.totalorder %v4288_v62, %v1398_v19  ;;  %1779 = vxpose.xlu1.c.b16.cont [5/8] %v1514_v17, 128 }
 0x107   : > { %v3179_v20 = vsel %vm1441_vm5, 1.0, %v3844_v32  ;;  %v3178_v21 = vsel %vm1440_vm6, 1.0, %v3844_v32 }
 0x108   : > { %v1523_v22 = vpack.c.bf16 %v3179_v20, %v3178_v21 }
 0x109   : > { %v1353_v23 = vpop.permute.xlu1 %1352  ;;  %v1350_v24 = vpop.permute.xlu0 %1349 }
 0x10a   : > { %vm1425_vm7 = vcmp.eq.s32.totalorder %v4288_v62, %v1353_v23  ;;  %vm1424_vm8 = vcmp.eq.s32.totalorder %v4288_v62, %v1350_v24  ;;  %1796 = vxpose.xlu0.c.b16.cont [6/8] %v1523_v22, 128 }
 0x10b   : > { %v3163_v25 = vsel %vm1425_vm7, 1.0, %v3844_v32  ;;  %v3162_v26 = vsel %vm1424_vm8, 1.0, %v3844_v32 }
 0x10c   : > { %v1515_v27 = vpack.c.bf16 %v3163_v25, %v3162_v26 }
 0x10d   : > { %v1407_v28 = vpop.permute.xlu1 %1406  ;;  %v1404_v29 = vpop.permute.xlu0 %1403 }
 0x10e   : > { %vm1443_vm9 = vcmp.eq.s32.totalorder %v4288_v62, %v1407_v28  ;;  %vm1442_vm10 = vcmp.eq.s32.totalorder %v4288_v62, %v1404_v29  ;;  %1780 = vxpose.xlu1.c.b16.cont [6/8] %v1515_v27, 128 }
 0x10f   : > { %v3181_v30 = vsel %vm1443_vm9, 1.0, %v3844_v32  ;;  %v3180_v31 = vsel %vm1442_vm10, 1.0, %v3844_v32 }
 0x110   : > { %v1524_v33 = vpack.c.bf16 %v3181_v30, %v3180_v31 }
 0x111   : > { %v1359_v34 = vpop.permute.xlu1 %1358  ;;  %v1356_v35 = vpop.permute.xlu0 %1355 }
 0x112   : > { %vm1427_vm11 = vcmp.eq.s32.totalorder %v4288_v62, %v1359_v34  ;;  %vm1426_vm12 = vcmp.eq.s32.totalorder %v4288_v62, %v1356_v35  ;;  %1797 = vxpose.xlu0.c.b16.cont [7/8] %v1524_v33, 128 }
 0x113   : > { %v3165_v36 = vsel %vm1427_vm11, 1.0, %v3844_v32  ;;  %v3164_v37 = vsel %vm1426_vm12, 1.0, %v3844_v32 }
 0x114   : > { %v1516_v38 = vpack.c.bf16 %v3165_v36, %v3164_v37 }
 0x115   : > { %v1413_v39 = vpop.permute.xlu1 %1412  ;;  %v1410_v40 = vpop.permute.xlu0 %1409 }
 0x116   : > { %vm1445_vm13 = vcmp.eq.s32.totalorder %v4288_v62, %v1413_v39  ;;  %vm1444_vm14 = vcmp.eq.s32.totalorder %v4288_v62, %v1410_v40  ;;  %1781 = vxpose.xlu1.c.b16.cont [7/8] %v1516_v38, 128 }
 0x117   : > { %v3183_v41 = vsel %vm1445_vm13, 1.0, %v3844_v32  ;;  %v3182_v42 = vsel %vm1444_vm14, 1.0, %v3844_v32 }
 0x118   : > { %v1525_v43 = vpack.c.bf16 %v3183_v41, %v3182_v42 }
 0x119   : > { %v1365_v44 = vpop.permute.xlu1 %1364  ;;  %v1362_v45 = vpop.permute.xlu0 %1361 }
 0x11a   : > { %vm1429_vm15 = vcmp.eq.s32.totalorder %v4288_v62, %v1365_v44  ;;  %vm1428_vm0 = vcmp.eq.s32.totalorder %v4288_v62, %v1362_v45  ;;  %1798 = vxpose.xlu0.c.b16.end [8/8] %v1525_v43, 128 }
 0x11b   : > { %v3167_v46 = vsel %vm1429_vm15, 1.0, %v3844_v32  ;;  %v3166_v47 = vsel %vm1428_vm0, 1.0, %v3844_v32 }
 0x11c   : > { %v1517_v48 = vpack.c.bf16 %v3167_v46, %v3166_v47 }
 0x11e   : > { %1782 = vxpose.xlu1.c.b16.end [8/8] %v1517_v48, 128 }
 0x164   : > { %v1799_v49 = vpop.trf.xlu0 }
 0x165   : > { %1839 = vmatprep.mubr.bf16.mxu0 %v1799_v49 }
 0x168   : > { %v1800_v50 = vpop.trf.xlu0 }
 0x169   : > { %1847 = vmatprep.mubr.bf16.mxu1 %v1800_v50 }
 0x179   : > { %v3461_v52 = vpop.f32.mrb[0].mxu0 }
 0x17a   : > { %v3603_v53 = vadd.f32 %v3461_v52, %v4407_v51  ;;  %v1584_v54 = vpop.f32.mrb[1].mxu0 }
 0x17b   : > { %v3604_v55 = vadd.f32 %v4407_v51, %v1584_v54  ;;  %v3462_v56 = vpop.f32.mrb[2].mxu0 }
 0x17c   : > { %v3605_v57 = vadd.f32 %v3462_v56, %v4407_v51  ;;  %v1587_v58 = vpop.f32.mrb[3].mxu0  ;;  %v1713_v60 = vmax.f32 %v3603_v53, 0.0 }
 0x17d   : > { %v3606_v59 = vadd.f32 %v4407_v51, %v1587_v58  ;;  %v1711_v63 = vmax.f32 %v3604_v55, 0.0 }
 0x17e   : > { %v1714_v61 = vmax.f32 %v3605_v57, 0.0 }
 0x17f   : > { %v1712_v0 = vmax.f32 %v3606_v59, 0.0 }
 0x180   : > { %v4413_v1 = vpack.c.bf16 %v1714_v61, %v1713_v60 }
 0x181   : > { %v4415_v2 = vpack.c.bf16 %v1712_v0, %v1711_v63  ;;  %v3465_v3 = vpop.f32.mrb[4].mxu0 }
 0x182   : > { %v3607_v4 = vadd.f32 %v3465_v3, %v4407_v51  ;;  %v1600_v5 = vpop.f32.mrb[5].mxu0 }
 0x183   : > { %v3608_v6 = vadd.f32 %v4407_v51, %v1600_v5  ;;  %v3466_v7 = vpop.f32.mrb[6].mxu0 }
 0x184   : > { %v3609_v8 = vadd.f32 %v3466_v7, %v4407_v51  ;;  %v1603_v9 = vpop.f32.mrb[7].mxu0  ;;  %v1717_v11 = vmax.f32 %v3607_v4, 0.0 }
 0x185   : > { %v3610_v10 = vadd.f32 %v4407_v51, %v1603_v9  ;;  %v1715_v13 = vmax.f32 %v3608_v6, 0.0 }
 0x186   : > { %v1718_v12 = vmax.f32 %v3609_v8, 0.0 }
 0x187   : > { %v1716_v14 = vmax.f32 %v3610_v10, 0.0 }
 0x188   : > { %v4421_v15 = vpack.c.bf16 %v1718_v12, %v1717_v11 }
 0x189   : > { %v4423_v16 = vpack.c.bf16 %v1716_v14, %v1715_v13  ;;  %v3469_v17 = vpop.f32.mrb[8].mxu0 }
 0x18a   : > { %v3611_v18 = vadd.f32 %v3469_v17, %v4407_v51  ;;  %v1616_v19 = vpop.f32.mrb[9].mxu0 }
 0x18b   : > { %v3612_v20 = vadd.f32 %v4407_v51, %v1616_v19  ;;  %v3470_v21 = vpop.f32.mrb[10].mxu0 }
 0x18c   : > { %v3613_v22 = vadd.f32 %v3470_v21, %v4407_v51  ;;  %v1619_v23 = vpop.f32.mrb[11].mxu0  ;;  %v1721_v25 = vmax.f32 %v3611_v18, 0.0 }
 0x18d   : > { %v3614_v24 = vadd.f32 %v4407_v51, %v1619_v23  ;;  %v1719_v27 = vmax.f32 %v3612_v20, 0.0 }
 0x18e   : > { %v1722_v26 = vmax.f32 %v3613_v22, 0.0 }
 0x18f   : > { %v1720_v28 = vmax.f32 %v3614_v24, 0.0 }
 0x190   : > { %v4429_v29 = vpack.c.bf16 %v1722_v26, %v1721_v25 }
 0x191   : > { %v4431_v30 = vpack.c.bf16 %v1720_v28, %v1719_v27  ;;  %v3473_v31 = vpop.f32.mrb[12].mxu0 }
 0x192   : > { %v3615_v33 = vadd.f32 %v3473_v31, %v4407_v51  ;;  %v1632_v34 = vpop.f32.mrb[13].mxu0 }
 0x193   : > { %v3616_v35 = vadd.f32 %v4407_v51, %v1632_v34  ;;  %v3474_v36 = vpop.f32.mrb[14].mxu0 }
 0x194   : > { %v3617_v37 = vadd.f32 %v3474_v36, %v4407_v51  ;;  %v1635_v38 = vpop.f32.mrb[15].mxu0  ;;  %v1725_v40 = vmax.f32 %v3615_v33, 0.0 }
 0x195   : > { %v3618_v39 = vadd.f32 %v4407_v51, %v1635_v38  ;;  %v1723_v42 = vmax.f32 %v3616_v35, 0.0 }
 0x196   : > { %v1726_v41 = vmax.f32 %v3617_v37, 0.0 }
 0x197   : > { %v1724_v43 = vmax.f32 %v3618_v39, 0.0 }
 0x198   : > { %v4437_v44 = vpack.c.bf16 %v1726_v41, %v1725_v40 }
 0x199   : > { %v4439_v45 = vpack.c.bf16 %v1724_v43, %v1723_v42  ;;  %v3477_v46 = vpop.f32.mrb[16].mxu0  ;;  %v1783_v43 = vpop.trf.xlu1 }
 0x19a   : > { %v3619_v47 = vadd.f32 %v3477_v46, %v4407_v51  ;;  %v1648_v48 = vpop.f32.mrb[17].mxu0  ;;  %v1801_v46 = vpop.trf.xlu0 }
 0x19b   : > { %v3620_v49 = vadd.f32 %v4407_v51, %v1648_v48  ;;  %v3478_v50 = vpop.f32.mrb[18].mxu0 }
 0x19c   : > { %v3621_v52 = vadd.f32 %v3478_v50, %v4407_v51  ;;  %v1651_v53 = vpop.f32.mrb[19].mxu0  ;;  %v1729_v55 = vmax.f32 %v3619_v47, 0.0 }
 0x19d   : > { %v3622_v54 = vadd.f32 %v4407_v51, %v1651_v53  ;;  %v1727_v57 = vmax.f32 %v3620_v49, 0.0  ;;  %v3733_v49 = vld [vmem:[%s3959_s28 + $0x18] sm:$0xff]   ;;  %v3735_v53 = vld [vmem:[%s3959_s28 + $0x28] sm:$0xff]  }
 0x19e   : > { %v1730_v56 = vmax.f32 %v3621_v52, 0.0  ;;  %v1802_v48 = vpop.trf.xlu0 }
 0x19f   : > { %v1728_v58 = vmax.f32 %v3622_v54, 0.0 }
 0x1a0   : > { %v1752_v59 = vpack.c.bf16 %v1730_v56, %v1729_v55 }
 0x1a1   : > { %v1751_v60 = vpack.c.bf16 %v1728_v58, %v1727_v57  ;;  %v3481_v61 = vpop.f32.mrb[20].mxu0 }
 0x1a2   : > { %v3623_v63 = vadd.f32 %v3481_v61, %v4407_v51  ;;  %v1664_v0 = vpop.f32.mrb[21].mxu0  ;;  %v1803_v52 = vpop.trf.xlu0  ;;  %v3736_v61 = vld [vmem:[%s3959_s28 + $0x30] sm:$0xff]  }
 0x1a3   : > { %v3624_v3 = vadd.f32 %v4407_v51, %v1664_v0  ;;  %v3482_v4 = vpop.f32.mrb[22].mxu0  ;;  %3295 = vmatprep.subr.bf16.mxu0 %v1751_v60  ;;  %3587 = vmatprep.subr.bf16.mxu1 %v1751_v60  ;;  %v3738_v0 = vld [vmem:[%s3968_s19] sm:$0xff]  }
 0x1a4   : > { %v3625_v5 = vadd.f32 %v3482_v4, %v4407_v51  ;;  %v1667_v6 = vpop.f32.mrb[23].mxu0  ;;  %3296 = vmatpush3.bf16.msra.mxu0 %v4415_v2  ;;  %3595 = vmatpush3.bf16.msra.mxu1 %v4415_v2  ;;  %v1733_v8 = vmax.f32 %v3623_v63, 0.0  ;;  %v3737_v63 = vld [vmem:[%s3959_s28 + $0x38] sm:$0xff]  }
 0x1a5   : > { %v3626_v7 = vadd.f32 %v4407_v51, %v1667_v6  ;;  %3297 = vmatprep.subr.bf16.mxu0 %v1752_v59  ;;  %3588 = vmatprep.subr.bf16.mxu1 %v1752_v59  ;;  %v1731_v10 = vmax.f32 %v3624_v3, 0.0 }
 0x1a6   : > { %v1734_v9 = vmax.f32 %v3625_v5, 0.0  ;;  %v1804_v55 = vpop.trf.xlu0 }
 0x1a7   : > { %v1732_v11 = vmax.f32 %v3626_v7, 0.0 }
 0x1a8   : > { %v1754_v12 = vpack.c.bf16 %v1734_v9, %v1733_v8  ;;  %3298 = vmatpush3.bf16.msra.mxu0 %v4413_v1  ;;  %3596 = vmatpush3.bf16.msra.mxu1 %v4413_v1  ;;  %v4482_v8 = vld [vmem:[#allocation2] sm:$0xff] }
 0x1a9   : > { %v1753_v13 = vpack.c.bf16 %v1732_v11, %v1731_v10  ;;  %v3485_v14 = vpop.f32.mrb[24].mxu0 }
 0x1aa   : > { %v3627_v17 = vadd.f32 %v3485_v14, %v4407_v51  ;;  %v1680_v18 = vpop.f32.mrb[25].mxu0  ;;  %v1805_v57 = vpop.trf.xlu0  ;;  %v4486_v14 = vld [vmem:[#allocation2 + $0x8] sm:$0xff] }
 0x1ab   : > { %v3628_v2 = vadd.f32 %v4407_v51, %v1680_v18  ;;  %v3486_v19 = vpop.f32.mrb[26].mxu0  ;;  %3299 = vmatprep.subr.bf16.mxu0 %v1753_v13  ;;  %3589 = vmatprep.subr.bf16.mxu1 %v1753_v13  ;;  %v4488_v18 = vld [vmem:[#allocation2 + $0x18] sm:$0xff] }
 0x1ac   : > { %v3629_v20 = vadd.f32 %v3486_v19, %v4407_v51  ;;  %v1683_v21 = vpop.f32.mrb[27].mxu0  ;;  %3300 = vmatpush3.bf16.msra.mxu0 %v4423_v16  ;;  %3597 = vmatpush3.bf16.msra.mxu1 %v4423_v16  ;;  %v1737_v1 = vmax.f32 %v3627_v17, 0.0 }
 0x1ad   : > { %v3630_v22 = vadd.f32 %v4407_v51, %v1683_v21  ;;  %3301 = vmatprep.subr.bf16.mxu0 %v1754_v12  ;;  %3590 = vmatprep.subr.bf16.mxu1 %v1754_v12  ;;  %v1735_v24 = vmax.f32 %v3628_v2, 0.0  ;;  %v4484_v12 = vld [vmem:[#allocation2 + $0x10] sm:$0xff] }
 0x1ae   : > { %v1738_v23 = vmax.f32 %v3629_v20, 0.0  ;;  %v1806_v59 = vpop.trf.xlu0 }
 0x1af   : > { %v1736_v25 = vmax.f32 %v3630_v22, 0.0 }
 0x1b0   : > { %v1756_v26 = vpack.c.bf16 %v1738_v23, %v1737_v1  ;;  %3302 = vmatpush3.bf16.msra.mxu0 %v4421_v15  ;;  %3598 = vmatpush3.bf16.msra.mxu1 %v4421_v15 }
 0x1b1   : > { %v1755_v27 = vpack.c.bf16 %v1736_v25, %v1735_v24  ;;  %v3489_v28 = vpop.f32.mrb[28].mxu0 }
 0x1b2   : > { %v3631_v31 = vadd.f32 %v3489_v28, %v4407_v51  ;;  %v1696_v33 = vpop.f32.mrb[29].mxu0 }
 0x1b3   : > { %v3632_v16 = vadd.f32 %v4407_v51, %v1696_v33  ;;  %v3490_v34 = vpop.f32.mrb[30].mxu0  ;;  %3303 = vmatprep.subr.bf16.mxu0 %v1755_v27  ;;  %3591 = vmatprep.subr.bf16.mxu1 %v1755_v27  ;;  %v3739_v27 = vld [vmem:[%s3968_s19 + $0x8] sm:$0xff]   ;;  %v4495_v33 = vld [vmem:[#allocation2 + $0x20] sm:$0xff] }
 0x1b4   : > { %v3633_v35 = vadd.f32 %v3490_v34, %v4407_v51  ;;  %v1699_v36 = vpop.f32.mrb[31].mxu0  ;;  %3304 = vmatpush3.bf16.msra.mxu0 %v4431_v30  ;;  %3599 = vmatpush3.bf16.msra.mxu1 %v4431_v30  ;;  %v1741_v15 = vmax.f32 %v3631_v31, 0.0  ;;  %v1784_v30 = vpop.trf.xlu1  ;;  %v4497_v34 = vld [vmem:[#allocation2 + $0x28] sm:$0xff] }
 0x1b5   : > { %v3634_v37 = vadd.f32 %v4407_v51, %v1699_v36  ;;  %3305 = vmatprep.subr.bf16.mxu0 %v1756_v26  ;;  %3592 = vmatprep.subr.bf16.mxu1 %v1756_v26  ;;  %v1739_v39 = vmax.f32 %v3632_v16, 0.0  ;;  %v3730_v51 = vld [vmem:[%s3959_s28] sm:$0xff]   ;;  %v3740_v36 = vld [vmem:[%s3968_s19 + $0x10] sm:$0xff]  }
 0x1b6   : > { %v1742_v38 = vmax.f32 %v3633_v35, 0.0 }
 0x1b7   : > { %v1740_v40 = vmax.f32 %v3634_v37, 0.0 }
 0x1b8   : > { %v1758_v41 = vpack.c.bf16 %v1742_v38, %v1741_v15  ;;  %3306 = vmatpush3.bf16.msra.mxu0 %v4429_v29  ;;  %3600 = vmatpush3.bf16.msra.mxu1 %v4429_v29  ;;  %v3731_v29 = vld [vmem:[%s3959_s28 + $0x8] sm:$0xff]   ;;  %v1785_v47 = vpop.trf.xlu1 }
 0x1b9   : > { %v1757_v42 = vpack.c.bf16 %v1740_v40, %v1739_v39 }
 0x1bb   : > { %3307 = vmatprep.subr.bf16.mxu0 %v1757_v42  ;;  %3593 = vmatprep.subr.bf16.mxu1 %v1757_v42 }
 0x1bc   : > { %3308 = vmatpush3.bf16.msra.mxu0 %v4439_v45  ;;  %3601 = vmatpush3.bf16.msra.mxu1 %v4439_v45  ;;  %v3732_v45 = vld [vmem:[%s3959_s28 + $0x10] sm:$0xff]   ;;  %v1786_v50 = vpop.trf.xlu1 }
 0x1bd   : > { %3309 = vmatprep.subr.bf16.mxu0 %v1758_v41  ;;  %3594 = vmatprep.subr.bf16.mxu1 %v1758_v41  ;;  %v3741_v41 = vld [vmem:[%s3968_s19 + $0x18] sm:$0xff]  }
 0x1c0   : > { %3310 = vmatpush3.bf16.msra.mxu0 %v4437_v44  ;;  %3602 = vmatpush3.bf16.msra.mxu1 %v4437_v44  ;;  %v3734_v44 = vld [vmem:[%s3959_s28 + $0x20] sm:$0xff]   ;;  %v1787_v54 = vpop.trf.xlu1 }
 0x1c1   : > { %3491 = vmatprep.subr.bf16.mxu1 %v3730_v51 }
 0x1c3   : > { %1840 = vmatmul.mubr.bf16.vlgmr.msra.gmra.mrb[32].mxu0 %v1783_v43  ;;  %1848 = vmatmul.mubr.bf16.vlgmr.msra.gmra.mrb[0].mxu1 %v1784_v30 }
 0x1c4   : > { %1855 = vmatprep.mubr.bf16.mxu1 %v1801_v46  ;;  %3492 = vmatpush3.bf16.msra.mxu1 %v3730_v51  ;;  %v1788_v56 = vpop.trf.xlu1  ;;  %v4503_v51 = vld [vmem:[#allocation2 + $0x30] sm:$0xff]  ;;  %v4505_v46 = vld [vmem:[#allocation2 + $0x38] sm:$0xff] }
 0x1c5   : > { %3493 = vmatprep.subr.bf16.mxu1 %v3731_v29 }
 0x1c8   : > { %3494 = vmatpush3.bf16.msra.mxu1 %v3731_v29  ;;  %v1789_v58 = vpop.trf.xlu1 }
 0x1c9   : > { %3495 = vmatprep.subr.bf16.mxu1 %v3732_v45 }
 0x1cb   : > { %1856 = vmatmul.mubr.bf16.gmra.mrb[4].mxu1 %v1785_v47 }
 0x1cc   : > { %1863 = vmatprep.mubr.bf16.mxu1 %v1802_v48  ;;  %3496 = vmatpush3.bf16.msra.mxu1 %v3732_v45  ;;  %v1790_v60 = vpop.trf.xlu1  ;;  %v3742_v45 = vld [vmem:[%s3968_s19 + $0x20] sm:$0xff]  }
 0x1cd   : > { %3497 = vmatprep.subr.bf16.mxu1 %v3733_v49 }
 0x1d0   : > { %3498 = vmatpush3.bf16.msra.mxu1 %v3733_v49 }
 0x1d1   : > { %3499 = vmatprep.subr.bf16.mxu1 %v3734_v44 }
 0x1d3   : > { %1864 = vmatmul.mubr.bf16.gmra.mrb[8].mxu1 %v1786_v50 }
 0x1d4   : > { %1871 = vmatprep.mubr.bf16.mxu1 %v1803_v52  ;;  %3500 = vmatpush3.bf16.msra.mxu1 %v3734_v44  ;;  %v3743_v52 = vld [vmem:[%s3968_s19 + $0x28] sm:$0xff]  }
 0x1d5   : > { %3501 = vmatprep.subr.bf16.mxu1 %v3735_v53 }
 0x1d8   : > { %3502 = vmatpush3.bf16.msra.mxu1 %v3735_v53 }
 0x1d9   : > { %3503 = vmatprep.subr.bf16.mxu1 %v3736_v61 }
 0x1db   : > { %1872 = vmatmul.mubr.bf16.gmra.mrb[12].mxu1 %v1787_v54 }
 0x1dc   : > { %1879 = vmatprep.mubr.bf16.mxu1 %v1804_v55  ;;  %3504 = vmatpush3.bf16.msra.mxu1 %v3736_v61  ;;  %v4511_v55 = vld [vmem:[#allocation2 + $0x40] sm:$0xff] }
 0x1dd   : > { %3505 = vmatprep.subr.bf16.mxu1 %v3737_v63 }
 0x1e0   : > { %3506 = vmatpush3.bf16.msra.mxu1 %v3737_v63 }
 0x1e1   : > { %3523 = vmatprep.subr.bf16.mxu1 %v3738_v0 }
 0x1e3   : > { %1880 = vmatmul.mubr.bf16.gmra.mrb[16].mxu1 %v1788_v56 }
 0x1e4   : > { %1887 = vmatprep.mubr.bf16.mxu1 %v1805_v57  ;;  %v4513_v57 = vld [vmem:[#allocation2 + $0x48] sm:$0xff] }
 0x1eb   : > { %1888 = vmatmul.mubr.bf16.gmra.mrb[20].mxu1 %v1789_v58 }
 0x1ec   : > { %1895 = vmatprep.mubr.bf16.mxu1 %v1806_v59 }
 0x1f3   : > { %1896 = vmatmul.mubr.bf16.gmra.mrb[24].mxu1 %v1790_v60 }
 0x296   : > { %v3311_v3 = vpop.f32.mrb[32].mxu0  ;;  %v3317_v4 = vpop.f32.mrb[0].mxu1 }
 0x297   : > { %v3312_v5 = vpop.f32.mrb[33].mxu0  ;;  %v3318_v6 = vpop.f32.mrb[1].mxu1 }
 0x298   : > { %v3313_v7 = vadd.f32 %v3312_v5, %v3311_v3  ;;  %v3314_v9 = vpop.f32.mrb[34].mxu0  ;;  %v3319_v10 = vadd.f32 %v3318_v6, %v3317_v4  ;;  %v3320_v11 = vpop.f32.mrb[2].mxu1  ;;  %v4517_v5 = vld [vmem:[#allocation2 + $0x50] sm:$0xff] }
 0x299   : > { %v3315_v13 = vpop.f32.mrb[35].mxu0  ;;  %v3321_v17 = vpop.f32.mrb[3].mxu1 }
 0x29a   : > { %v3316_v2 = vadd.f32 %v3315_v13, %v3314_v9  ;;  %v3322_v19 = vadd.f32 %v3321_v17, %v3320_v11  ;;  %v1971_v20 = vadd.f32 %v3313_v7, %v4482_v8  ;;  %v1973_v21 = vadd.f32 %v3319_v10, %v4484_v12  ;;  %v4519_v7 = vld [vmem:[#allocation2 + $0x58] sm:$0xff] }
 0x29c   : > { %v1972_v22 = vadd.f32 %v3316_v2, %v4486_v14  ;;  %v1974_v1 = vadd.f32 %v3322_v19, %v4488_v18 }
 0x29e   : > { %v1988_v23 = vpack.c.bf16 %v1974_v1, %v1973_v21  ;;  %v1987_v24 = vpack.c.bf16 %v1972_v22, %v1971_v20  ;;  %v3323_v25 = vpop.f32.mrb[4].mxu1  ;;  %v4523_v21 = vld [vmem:[#allocation2 + $0x60] sm:$0xff]  ;;  %v4525_v1 = vld [vmem:[#allocation2 + $0x68] sm:$0xff] }
 0x29f   : > { %v3324_v26 = vpop.f32.mrb[5].mxu1 }
 0x2a0   : > { %3507 = vmatprep.mubr.bf16.mxu1 %v1987_v24  ;;  %v3325_v28 = vadd.f32 %v3324_v26, %v3323_v25  ;;  %v3326_v31 = vpop.f32.mrb[6].mxu1 }
 0x2a1   : > { %3508 = vmatmul.mubr.bf16.vlgmr.msra.gmra.mrb[28].mxu1 %v1988_v23  ;;  %v3327_v16 = vpop.f32.mrb[7].mxu1 }
 0x2a2   : > { %v3328_v35 = vadd.f32 %v3327_v16, %v3326_v31  ;;  %3524 = vmatpush3.bf16.msra.mxu1 %v3738_v0  ;;  %v1975_v37 = vadd.f32 %v3325_v28, %v4495_v33 }
 0x2a3   : > { %3525 = vmatprep.subr.bf16.mxu1 %v3739_v27 }
 0x2a4   : > { %v1976_v15 = vadd.f32 %v3328_v35, %v4497_v34  ;;  %v4529_v35 = vld [vmem:[#allocation2 + $0x70] sm:$0xff] }
 0x2a6   : > { %v3329_v38 = vpop.f32.mrb[8].mxu1  ;;  %v1989_v39 = vpack.c.bf16 %v1976_v15, %v1975_v37  ;;  %3526 = vmatpush3.bf16.msra.mxu1 %v3739_v27  ;;  %v4531_v37 = vld [vmem:[#allocation2 + $0x78] sm:$0xff] }
 0x2a7   : > { %v3330_v40 = vpop.f32.mrb[9].mxu1  ;;  %3527 = vmatprep.subr.bf16.mxu1 %v3740_v36 }
 0x2a8   : > { %v3331_v42 = vadd.f32 %v3330_v40, %v3329_v38  ;;  %v3332_v43 = vpop.f32.mrb[10].mxu1  ;;  %3511 = vmatprep.mubr.bf16.mxu1 %v1989_v39 }
 0x2a9   : > { %v3333_v30 = vpop.f32.mrb[11].mxu1 }
 0x2aa   : > { %v3334_v29 = vadd.f32 %v3333_v30, %v3332_v43  ;;  %3528 = vmatpush3.bf16.msra.mxu1 %v3740_v36  ;;  %v1977_v47 = vadd.f32 %v3331_v42, %v4503_v51  ;;  %v3745_v42 = vld [vmem:[%s3968_s19 + $0x38] sm:$0xff]   ;;  %v3216_v43 = vld [vmem:[%s626_s15] ss:$0 sm:$0xff] }
 0x2ab   : > { %3529 = vmatprep.subr.bf16.mxu1 %v3741_v41 }
 0x2ac   : > { %v1978_v48 = vadd.f32 %v3334_v29, %v4505_v46 }
 0x2ae   : > { %v1990_v49 = vpack.c.bf16 %v1978_v48, %v1977_v47  ;;  %v3335_v44 = vpop.f32.mrb[12].mxu1  ;;  %3530 = vmatpush3.bf16.msra.mxu1 %v3741_v41  ;;  %v3744_v41 = vld [vmem:[%s3968_s19 + $0x30] sm:$0xff]  }
 0x2af   : > { %v3336_v50 = vpop.f32.mrb[13].mxu1  ;;  %3531 = vmatprep.subr.bf16.mxu1 %v3742_v45 }
 0x2b0   : > { %3512 = vmatmul.mubr.bf16.gmra.mrb[32].mxu1 %v1990_v49  ;;  %v3337_v53 = vadd.f32 %v3336_v50, %v3335_v44  ;;  %v3338_v54 = vpop.f32.mrb[14].mxu1 }
 0x2b1   : > { %v3339_v56 = vpop.f32.mrb[15].mxu1 }
 0x2b2   : > { %v3340_v58 = vadd.f32 %v3339_v56, %v3338_v54  ;;  %3532 = vmatpush3.bf16.msra.mxu1 %v3742_v45  ;;  %v1979_v59 = vadd.f32 %v3337_v53, %v4511_v55 }
 0x2b3   : > { %3533 = vmatprep.subr.bf16.mxu1 %v3743_v52 }
 0x2b4   : > { %v1980_v60 = vadd.f32 %v3340_v58, %v4513_v57 }
 0x2b6   : > { %v3341_v61 = vpop.f32.mrb[16].mxu1  ;;  %v1991_v63 = vpack.c.bf16 %v1980_v60, %v1979_v59  ;;  %3534 = vmatpush3.bf16.msra.mxu1 %v3743_v52 }
 0x2b7   : > { %v3342_v0 = vpop.f32.mrb[17].mxu1  ;;  %3535 = vmatprep.subr.bf16.mxu1 %v3744_v41 }
 0x2b8   : > { %v3343_v3 = vadd.f32 %v3342_v0, %v3341_v61  ;;  %v3344_v4 = vpop.f32.mrb[18].mxu1  ;;  %3515 = vmatprep.mubr.bf16.mxu1 %v1991_v63 }
 0x2b9   : > { %v3345_v6 = vpop.f32.mrb[19].mxu1 }
 0x2ba   : > { %v3346_v9 = vadd.f32 %v3345_v6, %v3344_v4  ;;  %v1981_v10 = vadd.f32 %v3343_v3, %v4517_v5  ;;  %3536 = vmatpush3.bf16.msra.mxu1 %v3744_v41 }
 0x2bb   : > { %3537 = vmatprep.subr.bf16.mxu1 %v3745_v42 }
 0x2bc   : > { %v1982_v11 = vadd.f32 %v3346_v9, %v4519_v7 }
 0x2be   : > { %v1992_v13 = vpack.c.bf16 %v1982_v11, %v1981_v10  ;;  %v3347_v17 = vpop.f32.mrb[20].mxu1  ;;  %3538 = vmatpush3.bf16.msra.mxu1 %v3745_v42 }
 0x2bf   : > { %v3348_v2 = vpop.f32.mrb[21].mxu1 }
 0x2c0   : > { %3516 = vmatmul.mubr.bf16.gmra.mrb[36].mxu1 %v1992_v13  ;;  %v3349_v19 = vadd.f32 %v3348_v2, %v3347_v17  ;;  %v3350_v20 = vpop.f32.mrb[22].mxu1 }
 0x2c1   : > { %v3351_v22 = vpop.f32.mrb[23].mxu1 }
 0x2c2   : > { %v3352_v23 = vadd.f32 %v3351_v22, %v3350_v20  ;;  %v1983_v24 = vadd.f32 %v3349_v19, %v4523_v21 }
 0x2c4   : > { %v1984_v25 = vadd.f32 %v3352_v23, %v4525_v1 }
 0x2c6   : > { %v3353_v26 = vpop.f32.mrb[24].mxu1  ;;  %v1993_v27 = vpack.c.bf16 %v1984_v25, %v1983_v24 }
 0x2c7   : > { %v3354_v28 = vpop.f32.mrb[25].mxu1 }
 0x2c8   : > { %v3355_v31 = vadd.f32 %v3354_v28, %v3353_v26  ;;  %v3356_v16 = vpop.f32.mrb[26].mxu1  ;;  %3519 = vmatprep.mubr.bf16.mxu1 %v1993_v27 }
 0x2c9   : > { %v3357_v36 = vpop.f32.mrb[27].mxu1 }
 0x2ca   : > { %v3358_v15 = vadd.f32 %v3357_v36, %v3356_v16  ;;  %v1985_v38 = vadd.f32 %v3355_v31, %v4529_v35 }
 0x2cc   : > { %v1986_v39 = vadd.f32 %v3358_v15, %v4531_v37 }
 0x2ce   : > { %v1994_v40 = vpack.c.bf16 %v1986_v39, %v1985_v38 }
 0x2d0   : > { %3520 = vmatmul.mubr.bf16.gmra.mrb[40].mxu1 %v1994_v40 }
 0x374   : > { %v3509_v30 = vpop.f32.mrb[28].mxu1 }
 0x375   : > { %v2109_v29 = vadd.f32 %v3509_v30, %v3216_v43  ;;  %v2100_v45 = vpop.f32.mrb[29].mxu1 }
 0x376   : > { %v2101_v47 = vadd.f32 %v3216_v43, %v2100_v45  ;;  %v3510_v48 = vpop.f32.mrb[30].mxu1 }
 0x377   : > { %v2112_v49 = vadd.f32 %v3510_v48, %v3216_v43  ;;  %v2103_v44 = vpop.f32.mrb[31].mxu1  ;;  %v2165_v52 = vmax.f32 %v2109_v29, 0.0 }
 0x378   : > { %v2104_v50 = vadd.f32 %v3216_v43, %v2103_v44  ;;  %v2163_v54 = vmax.f32 %v2101_v47, 0.0 }
 0x379   : > { %v2166_v53 = vmax.f32 %v2112_v49, 0.0 }
 0x37a   : > { %v2164_v56 = vmax.f32 %v2104_v50, 0.0 }
 0x37b   : > { %v2180_v58 = vpack.c.bf16 %v2166_v53, %v2165_v52 }
 0x37c   : > { %v2179_v59 = vpack.c.bf16 %v2164_v56, %v2163_v54  ;;  %v3225_v56 = vld [vmem:[%s634_s18] ss:$0 sm:$0xff] }
 0x37e   : > { %3539 = vmatprep.mubr.bf16.mxu1 %v2179_v59  ;;  %v4549_v59 = vsel %vm2355_vm1, 1.0, %v3844_v32 }
 0x37f   : > { %3540 = vmatmul.mubr.bf16.vlgmr.msra.gmra.mrb[44].mxu1 %v2180_v58 }
 0x383   : > { %v3513_v60 = vpop.f32.mrb[32].mxu1 }
 0x384   : > { %v2125_v61 = vadd.f32 %v3513_v60, %v3216_v43  ;;  %v2116_v63 = vpop.f32.mrb[33].mxu1 }
 0x385   : > { %v2117_v0 = vadd.f32 %v3216_v43, %v2116_v63  ;;  %v3514_v3 = vpop.f32.mrb[34].mxu1 }
 0x386   : > { %v2128_v4 = vadd.f32 %v3514_v3, %v3216_v43  ;;  %v2119_v6 = vpop.f32.mrb[35].mxu1  ;;  %v2169_v10 = vmax.f32 %v2125_v61, 0.0 }
 0x387   : > { %v2120_v9 = vadd.f32 %v3216_v43, %v2119_v6  ;;  %v2167_v13 = vmax.f32 %v2117_v0, 0.0 }
 0x388   : > { %v2170_v11 = vmax.f32 %v2128_v4, 0.0 }
 0x389   : > { %v2168_v17 = vmax.f32 %v2120_v9, 0.0 }
 0x38a   : > { %v2182_v2 = vpack.c.bf16 %v2170_v11, %v2169_v10 }
 0x38b   : > { %v2181_v19 = vpack.c.bf16 %v2168_v17, %v2167_v13 }
 0x38d   : > { %3543 = vmatprep.mubr.bf16.mxu1 %v2181_v19 }
 0x38e   : > { %3544 = vmatmul.mubr.bf16.gmra.mrb[48].mxu1 %v2182_v2 }
 0x393   : > { %v3517_v20 = vpop.f32.mrb[36].mxu1 }
 0x394   : > { %v2141_v22 = vadd.f32 %v3517_v20, %v3216_v43  ;;  %v2132_v23 = vpop.f32.mrb[37].mxu1 }
 0x395   : > { %v2133_v24 = vadd.f32 %v3216_v43, %v2132_v23  ;;  %v3518_v25 = vpop.f32.mrb[38].mxu1 }
 0x396   : > { %v2144_v26 = vadd.f32 %v3518_v25, %v3216_v43  ;;  %v2135_v27 = vpop.f32.mrb[39].mxu1  ;;  %v2173_v31 = vmax.f32 %v2141_v22, 0.0 }
 0x397   : > { %v2136_v28 = vadd.f32 %v3216_v43, %v2135_v27  ;;  %v2171_v36 = vmax.f32 %v2133_v24, 0.0 }
 0x398   : > { %v2174_v16 = vmax.f32 %v2144_v26, 0.0 }
 0x399   : > { %v2172_v15 = vmax.f32 %v2136_v28, 0.0 }
 0x39a   : > { %v2184_v38 = vpack.c.bf16 %v2174_v16, %v2173_v31 }
 0x39b   : > { %v2183_v39 = vpack.c.bf16 %v2172_v15, %v2171_v36 }
 0x39d   : > { %3547 = vmatprep.mubr.bf16.mxu1 %v2183_v39 }
 0x39e   : > { %3548 = vmatmul.mubr.bf16.gmra.mrb[52].mxu1 %v2184_v38 }
 0x3a3   : > { %v3521_v40 = vpop.f32.mrb[40].mxu1 }
 0x3a4   : > { %v2157_v41 = vadd.f32 %v3521_v40, %v3216_v43  ;;  %v2148_v42 = vpop.f32.mrb[41].mxu1 }
 0x3a5   : > { %v2149_v30 = vadd.f32 %v3216_v43, %v2148_v42  ;;  %v3522_v29 = vpop.f32.mrb[42].mxu1 }
 0x3a6   : > { %v2160_v45 = vadd.f32 %v3522_v29, %v3216_v43  ;;  %v2151_v47 = vpop.f32.mrb[43].mxu1  ;;  %v2177_v49 = vmax.f32 %v2157_v41, 0.0 }
 0x3a7   : > { %v2152_v48 = vadd.f32 %v3216_v43, %v2151_v47  ;;  %v2175_v50 = vmax.f32 %v2149_v30, 0.0 }
 0x3a8   : > { %v2178_v44 = vmax.f32 %v2160_v45, 0.0 }
 0x3a9   : > { %v2176_v52 = vmax.f32 %v2152_v48, 0.0 }
 0x3aa   : > { %v2186_v53 = vpack.c.bf16 %v2178_v44, %v2177_v49 }
 0x3ab   : > { %v2185_v54 = vpack.c.bf16 %v2176_v52, %v2175_v50 }
 0x3ad   : > { %3551 = vmatprep.mubr.bf16.mxu1 %v2185_v54 }
 0x3ae   : > { %3552 = vmatmul.mubr.bf16.gmra.mrb[56].mxu1 %v2186_v53 }
 0x452   : > { %v3541_v58 = vpop.f32.mrb[44].mxu1 }
 0x453   : > { %v4551_v43 = vadd.f32 %v3541_v58, %v3225_v56  ;;  %v2292_v60 = vpop.f32.mrb[45].mxu1 }
 0x454   : > { %v3542_v61 = vpop.f32.mrb[46].mxu1  ;;  %v4553_v63 = vadd.f32 %v3225_v56, %v2292_v60 }
 0x455   : > { %v2295_v0 = vpop.f32.mrb[47].mxu1  ;;  %v2360_v3 = vmul.f32 %v4549_v59, %v4551_v43  ;;  %v4561_v6 = vadd.f32 %v3542_v61, %v3225_v56 }
 0x456   : > { %v4557_v62 = vadd.f32 %v3225_v56, %v2295_v0  ;;  %v2358_v32 = vmul.f32 %v4549_v59, %v4553_v63 }
 0x457   : > { %2378 = vadd.xlane.f32.xlu0 %v2360_v3  ;;  %v2361_v9 = vmul.f32 %v4549_v59, %v4561_v6 }
 0x458   : > { %v2359_v4 = vmul.f32 %v4549_v59, %v4557_v62 }
 0x45a   : > { %2376 = vadd.xlane.f32.xlu1 %v2359_v4 }
 0x45b   : > { %2374 = vadd.xlane.f32.xlu0 %v2358_v32 }
 0x45f   : > { %2380 = vadd.xlane.f32.xlu0 %v2361_v9 }
 0x461   : > { %v3545_v10 = vpop.f32.mrb[48].mxu1 }
 0x462   : > { %v4567_v11 = vadd.f32 %v3545_v10, %v3225_v56  ;;  %v2308_v13 = vpop.f32.mrb[49].mxu1 }
 0x463   : > { %v3546_v17 = vpop.f32.mrb[50].mxu1  ;;  %v4569_v2 = vadd.f32 %v3225_v56, %v2308_v13 }
 0x464   : > { %v4571_v19 = vadd.f32 %v3546_v17, %v3225_v56  ;;  %v2364_v20 = vmul.f32 %v4549_v59, %v4567_v11  ;;  %v2311_v22 = vpop.f32.mrb[51].mxu1 }
 0x465   : > { %v4575_v23 = vadd.f32 %v3225_v56, %v2311_v22  ;;  %v2362_v25 = vmul.f32 %v4549_v59, %v4569_v2 }
 0x466   : > { %2386 = vadd.xlane.f32.xlu1 %v2364_v20  ;;  %v2365_v24 = vmul.f32 %v4549_v59, %v4571_v19 }
 0x467   : > { %v2363_v26 = vmul.f32 %v4549_v59, %v4575_v23 }
 0x468   : > { %2388 = vadd.xlane.f32.xlu0 %v2365_v24 }
 0x46a   : > { %2382 = vadd.xlane.f32.xlu1 %v2362_v25 }
 0x46c   : > { %2384 = vadd.xlane.f32.xlu0 %v2363_v26 }
 0x471   : > { %v3549_v27 = vpop.f32.mrb[52].mxu1 }
 0x472   : > { %v4583_v28 = vadd.f32 %v3549_v27, %v3225_v56  ;;  %v2324_v31 = vpop.f32.mrb[53].mxu1 }
 0x473   : > { %v3550_v16 = vpop.f32.mrb[54].mxu1  ;;  %v4585_v36 = vadd.f32 %v3225_v56, %v2324_v31 }
 0x474   : > { %v4587_v15 = vadd.f32 %v3550_v16, %v3225_v56  ;;  %v2368_v38 = vmul.f32 %v4549_v59, %v4583_v28  ;;  %v2327_v39 = vpop.f32.mrb[55].mxu1 }
 0x475   : > { %v4591_v40 = vadd.f32 %v3225_v56, %v2327_v39  ;;  %v2366_v42 = vmul.f32 %v4549_v59, %v4585_v36 }
 0x476   : > { %2394 = vadd.xlane.f32.xlu1 %v2368_v38  ;;  %v2369_v41 = vmul.f32 %v4549_v59, %v4587_v15 }
 0x477   : > { %v2367_v30 = vmul.f32 %v4549_v59, %v4591_v40 }
 0x478   : > { %2396 = vadd.xlane.f32.xlu0 %v2369_v41 }
 0x47a   : > { %2390 = vadd.xlane.f32.xlu1 %v2366_v42 }
 0x47c   : > { %2392 = vadd.xlane.f32.xlu0 %v2367_v30 }
 0x481   : > { %v3553_v29 = vpop.f32.mrb[56].mxu1 }
 0x482   : > { %v2340_v45 = vpop.f32.mrb[57].mxu1  ;;  %v4601_v44 = vadd.f32 %v3553_v29, %v3225_v56 }
 0x483   : > { %v4599_v47 = vadd.f32 %v3225_v56, %v2340_v45  ;;  %v3554_v48 = vpop.f32.mrb[58].mxu1 }
 0x484   : > { %v2343_v49 = vpop.f32.mrb[59].mxu1  ;;  %v4607_v53 = vadd.f32 %v3554_v48, %v3225_v56  ;;  %v2372_v58 = vmul.f32 %v4549_v59, %v4601_v44 }
 0x485   : > { %v4603_v50 = vadd.f32 %v3225_v56, %v2343_v49  ;;  %v2370_v52 = vmul.f32 %v4549_v59, %v4599_v47 }
 0x486   : > { %v2373_v60 = vmul.f32 %v4549_v59, %v4607_v53 }
 0x487   : > { %2398 = vadd.xlane.f32.xlu1 %v2370_v52  ;;  %v2371_v54 = vmul.f32 %v4549_v59, %v4603_v50 }
 0x489   : > { %2400 = vadd.xlane.f32.xlu0 %v2371_v54 }
 0x48b   : > { %2402 = vadd.xlane.f32.xlu1 %v2372_v58 }
 0x48d   : > { %2404 = vadd.xlane.f32.xlu0 %v2373_v60 }
 0x4e4   : > { %v2379_v61 = vpop.xlane.xlu0 %2378 }
 0x4e5   : > { %v2408_v0 = vmul.f32 0.015625, %v2379_v61 }
 0x4e7   : > { %v2424_v3 = vsub.f32 %v4551_v43, %v2408_v0  ;;  %v2377_v4 = vpop.xlane.xlu1 %2376 }
 0x4e8   : > { %v2375_v56 = vpop.xlane.xlu0 %2374  ;;  %v2407_v10 = vmul.f32 0.015625, %v2377_v4 }
 0x4e9   : > { %v2406_v32 = vmul.f32 0.015625, %v2375_v56  ;;  %v4617_v9 = vmul.f32 %v4549_v59, %v2424_v3 }
 0x4ea   : > { %v2423_v43 = vsub.f32 %v4557_v62, %v2407_v10 }
 0x4eb   : > { %v2422_v13 = vsub.f32 %v4553_v63, %v2406_v32  ;;  %v2456_v17 = vmul.f32 %v4617_v9, %v4617_v9 }
 0x4ec   : > { %v2381_v20 = vpop.xlane.xlu0 %2380  ;;  %v4633_v63 = vmul.f32 %v4549_v59, %v2423_v43 }
 0x4ed   : > { %v2409_v22 = vmul.f32 0.015625, %v2381_v20  ;;  %2474 = vadd.xlane.f32.xlu1 %v2456_v17  ;;  %v4623_v24 = vmul.f32 %v4549_v59, %v2422_v13 }
 0x4ee   : > { %v2455_v42 = vmul.f32 %v4633_v63, %v4633_v63 }
 0x4ef   : > { %v2425_v25 = vsub.f32 %v4561_v6, %v2409_v22  ;;  %v2454_v26 = vmul.f32 %v4623_v24, %v4623_v24 }
 0x4f1   : > { %v4630_v27 = vmul.f32 %v4549_v59, %v2425_v25  ;;  %2470 = vadd.xlane.f32.xlu1 %v2454_v26 }
 0x4f3   : > { %v2387_v31 = vpop.xlane.xlu1 %2386  ;;  %v2457_v16 = vmul.f32 %v4630_v27, %v4630_v27 }
 0x4f4   : > { %v2412_v38 = vmul.f32 0.015625, %v2387_v31 }
 0x4f5   : > { %2476 = vadd.xlane.f32.xlu0 %v2457_v16  ;;  %v2389_v39 = vpop.xlane.xlu0 %2388 }
 0x4f6   : > { %v2428_v62 = vsub.f32 %v4567_v11, %v2412_v38  ;;  %v2413_v6 = vmul.f32 0.015625, %v2389_v39 }
 0x4f7   : > { %v2383_v41 = vpop.xlane.xlu1 %2382 }
 0x4f8   : > { %v4641_v30 = vmul.f32 %v4549_v59, %v2428_v62  ;;  %v2429_v29 = vsub.f32 %v4571_v19, %v2413_v6  ;;  %v2410_v45 = vmul.f32 0.015625, %v2383_v41 }
 0x4f9   : > { %2472 = vadd.xlane.f32.xlu0 %v2455_v42  ;;  %v2385_v48 = vpop.xlane.xlu0 %2384 }
 0x4fa   : > { %v4645_v49 = vmul.f32 %v4549_v59, %v2429_v29  ;;  %v2426_v52 = vsub.f32 %v4569_v2, %v2410_v45  ;;  %v2411_v54 = vmul.f32 0.015625, %v2385_v48  ;;  %v2460_v11 = vmul.f32 %v4641_v30, %v4641_v30 }
 0x4fc   : > { %v4651_v58 = vmul.f32 %v4549_v59, %v2426_v52  ;;  %v2427_v60 = vsub.f32 %v4575_v23, %v2411_v54  ;;  %2482 = vadd.xlane.f32.xlu1 %v2460_v11  ;;  %v2461_v19 = vmul.f32 %v4645_v49, %v4645_v49 }
 0x4fe   : > { %v4657_v61 = vmul.f32 %v4549_v59, %v2427_v60  ;;  %2484 = vadd.xlane.f32.xlu0 %v2461_v19  ;;  %v2458_v2 = vmul.f32 %v4651_v58, %v4651_v58 }
 0x500   : > { %2478 = vadd.xlane.f32.xlu1 %v2458_v2  ;;  %v2459_v0 = vmul.f32 %v4657_v61, %v4657_v61 }
 0x502   : > { %2480 = vadd.xlane.f32.xlu0 %v2459_v0 }
 0x503   : > { %v2395_v3 = vpop.xlane.xlu1 %2394 }
 0x504   : > { %v2416_v4 = vmul.f32 0.015625, %v2395_v3 }
 0x505   : > { %v2397_v56 = vpop.xlane.xlu0 %2396 }
 0x506   : > { %v2432_v23 = vsub.f32 %v4583_v28, %v2416_v4  ;;  %v2417_v32 = vmul.f32 0.015625, %v2397_v56 }
 0x507   : > { %v2391_v10 = vpop.xlane.xlu1 %2390 }
 0x508   : > { %v4665_v13 = vmul.f32 %v4549_v59, %v2432_v23  ;;  %v2433_v17 = vsub.f32 %v4587_v15, %v2417_v32  ;;  %v2414_v20 = vmul.f32 0.015625, %v2391_v10 }
 0x509   : > { %v2393_v22 = vpop.xlane.xlu0 %2392 }
 0x50a   : > { %v4669_v43 = vmul.f32 %v4549_v59, %v2433_v17  ;;  %v2430_v25 = vsub.f32 %v4585_v36, %v2414_v20  ;;  %v2415_v26 = vmul.f32 0.015625, %v2393_v22  ;;  %v2464_v31 = vmul.f32 %v4665_v13, %v4665_v13 }
 0x50c   : > { %v4675_v28 = vmul.f32 %v4549_v59, %v2430_v25  ;;  %v2431_v16 = vsub.f32 %v4591_v40, %v2415_v26  ;;  %2490 = vadd.xlane.f32.xlu1 %v2464_v31  ;;  %v2465_v15 = vmul.f32 %v4669_v43, %v4669_v43 }
 0x50e   : > { %v4681_v38 = vmul.f32 %v4549_v59, %v2431_v16  ;;  %2492 = vadd.xlane.f32.xlu0 %v2465_v15  ;;  %v2462_v36 = vmul.f32 %v4675_v28, %v4675_v28  ;;  %v4716_v16 = vld [vmem:[%s637_s4] ss:$0 sm:$0xff] }
 0x510   : > { %2486 = vadd.xlane.f32.xlu1 %v2462_v36  ;;  %v2463_v39 = vmul.f32 %v4681_v38, %v4681_v38 }
 0x512   : > { %2488 = vadd.xlane.f32.xlu0 %v2463_v39 }
 0x514   : > { %v2399_v62 = vpop.xlane.xlu1 %2398 }
 0x515   : > { %v2418_v6 = vmul.f32 0.015625, %v2399_v62 }
 0x516   : > { %v2401_v41 = vpop.xlane.xlu0 %2400 }
 0x517   : > { %v2434_v40 = vsub.f32 %v4599_v47, %v2418_v6  ;;  %v2419_v42 = vmul.f32 0.015625, %v2401_v41  ;;  %v4724_v6 = vld [vmem:[%s640_s6] ss:$0 sm:$0xff]  ;;  %s4951_s6 = sld [smem:[#allocation10_spill]] (!%p3237_p6) }
 0x518   : > { %v2403_v29 = vpop.xlane.xlu1 %2402 }
 0x519   : > { %v4689_v45 = vmul.f32 %v4549_v59, %v2434_v40  ;;  %v2435_v48 = vsub.f32 %v4603_v50, %v2419_v42  ;;  %v2420_v52 = vmul.f32 0.015625, %v2403_v29 }
 0x51a   : > { %v2405_v54 = vpop.xlane.xlu0 %2404 }
 0x51b   : > { %v4693_v11 = vmul.f32 %v4549_v59, %v2435_v48  ;;  %v2436_v60 = vsub.f32 %v4601_v44, %v2420_v52  ;;  %v2421_v19 = vmul.f32 0.015625, %v2405_v54  ;;  %v2466_v2 = vmul.f32 %v4689_v45, %v4689_v45 }
 0x51d   : > { %v4699_v47 = vmul.f32 %v4549_v59, %v2436_v60  ;;  %v2437_v0 = vsub.f32 %v4607_v53, %v2421_v19  ;;  %2494 = vadd.xlane.f32.xlu1 %v2466_v2  ;;  %v2467_v50 = vmul.f32 %v4693_v11, %v4693_v11 }
 0x51f   : > { %v4705_v3 = vmul.f32 %v4549_v59, %v2437_v0  ;;  %2496 = vadd.xlane.f32.xlu0 %v2467_v50  ;;  %v2468_v44 = vmul.f32 %v4699_v47, %v4699_v47 }
 0x521   : > { %2498 = vadd.xlane.f32.xlu1 %v2468_v44  ;;  %v2469_v4 = vmul.f32 %v4705_v3, %v4705_v3 }
 0x523   : > { %2500 = vadd.xlane.f32.xlu0 %v2469_v4 }
 0x57a   : > { %v2475_v56 = vpop.xlane.xlu1 %2474 }
 0x57b   : > { %v2504_v23 = vmul.f32 0.015625, %v2475_v56 }
 0x57d   : > { %v2520_v53 = vadd.f32 1e-05, %v2504_v23 }
 0x57e   : > { %v2471_v32 = vpop.xlane.xlu1 %2470 }
 0x57f   : > { %3746 = vrsqrt.f32 %v2520_v53  ;;  %v2502_v10 = vmul.f32 0.015625, %v2471_v32 }
 0x581   : > { %v2518_v17 = vadd.f32 1e-05, %v2502_v10 }
 0x582   : > { %v2477_v59 = vpop.xlane.xlu0 %2476 }
 0x583   : > { %3748 = vrsqrt.f32 %v2518_v17  ;;  %v2505_v20 = vmul.f32 0.015625, %v2477_v59 }
 0x585   : > { %v2521_v22 = vadd.f32 1e-05, %v2505_v20 }
 0x586   : > { %v2473_v25 = vpop.xlane.xlu0 %2472 }
 0x587   : > { %3750 = vrsqrt.f32 %v2521_v22  ;;  %v2503_v26 = vmul.f32 0.015625, %v2473_v25 }
 0x589   : > { %v3747_v31 = vpop.eup %3746  ;;  %v2519_v15 = vadd.f32 1e-05, %v2503_v26  ;;  %v2483_v36 = vpop.xlane.xlu1 %2482 }
 0x58a   : > { %v2552_v39 = vmul.f32 %v3747_v31, %v4617_v9  ;;  %v2508_v62 = vmul.f32 0.015625, %v2483_v36 }
 0x58b   : > { %3752 = vrsqrt.f32 %v2519_v15  ;;  %v2485_v41 = vpop.xlane.xlu0 %2484 }
 0x58c   : > { %v2575_v40 = vmul.f32 %v4716_v16, %v2552_v39  ;;  %v2524_v42 = vadd.f32 1e-05, %v2508_v62  ;;  %v2509_v29 = vmul.f32 0.015625, %v2485_v41 }
 0x58d   : > { %v3749_v48 = vpop.eup %3748  ;;  %v2479_v52 = vpop.xlane.xlu1 %2478 }
 0x58e   : > { %v2598_v54 = vadd.f32 %v4724_v6, %v2575_v40  ;;  %v2550_v60 = vmul.f32 %v3749_v48, %v4623_v24  ;;  %3754 = vrsqrt.f32 %v2524_v42  ;;  %v2525_v9 = vadd.f32 1e-05, %v2509_v29 }
 0x58f   : > { %v2506_v19 = vmul.f32 0.015625, %v2479_v52  ;;  %v2481_v2 = vpop.xlane.xlu0 %2480 }
 0x590   : > { %v2630_v0 = vmul.f32 0.70710677, %v2598_v54  ;;  %v2573_v50 = vmul.f32 %v4716_v16, %v2550_v60  ;;  %3756 = vrsqrt.f32 %v2525_v9  ;;  %v2507_v56 = vmul.f32 0.015625, %v2481_v2 }
 0x591   : > { %v3751_v44 = vpop.eup %3750  ;;  %v2522_v4 = vadd.f32 1e-05, %v2506_v19  ;;  %v2614_v60 = vmul.f32 0.5, %v2598_v54 }
 0x592   : > { %3758 = verf.f32 %v2630_v0  ;;  %v2596_v23 = vadd.f32 %v4724_v6, %v2573_v50  ;;  %v2553_v53 = vmul.f32 %v3751_v44, %v4630_v27  ;;  %v2523_v32 = vadd.f32 1e-05, %v2507_v56 }
 0x593   : > { %3760 = vrsqrt.f32 %v2522_v4 }
 0x594   : > { %v2628_v10 = vmul.f32 0.70710677, %v2596_v23  ;;  %v2576_v24 = vmul.f32 %v4716_v16, %v2553_v53  ;;  %3762 = vrsqrt.f32 %v2523_v32 }
 0x595   : > { %v3753_v17 = vpop.eup %3752 }
 0x596   : > { %3764 = verf.f32 %v2628_v10  ;;  %v2599_v59 = vadd.f32 %v4724_v6, %v2576_v24  ;;  %v2551_v20 = vmul.f32 %v3753_v17, %v4633_v63 }
 0x598   : > { %v3755_v22 = vpop.eup %3754  ;;  %v2631_v25 = vmul.f32 0.70710677, %v2599_v59  ;;  %v2574_v26 = vmul.f32 %v4716_v16, %v2551_v20 }
 0x599   : > { %v2556_v31 = vmul.f32 %v3755_v22, %v4641_v30  ;;  %v2491_v15 = vpop.xlane.xlu1 %2490  ;;  %v2612_v22 = vmul.f32 0.5, %v2596_v23 }
 0x59a   : > { %v3757_v27 = vpop.eup %3756  ;;  %3766 = verf.f32 %v2631_v25  ;;  %v2597_v36 = vadd.f32 %v4724_v6, %v2574_v26  ;;  %v2512_v39 = vmul.f32 0.015625, %v2491_v15 }
 0x59b   : > { %v2579_v62 = vmul.f32 %v4716_v16, %v2556_v31  ;;  %v2557_v41 = vmul.f32 %v3757_v27, %v4645_v49  ;;  %v2493_v40 = vpop.xlane.xlu0 %2492 }
 0x59c   : > { %v3759_v42 = vpop.eup %3758  ;;  %v2629_v29 = vmul.f32 0.70710677, %v2597_v36  ;;  %v2528_v63 = vadd.f32 1e-05, %v2512_v39  ;;  %v2513_v48 = vmul.f32 0.015625, %v2493_v40 }
 0x59d   : > { %v3761_v52 = vpop.eup %3760  ;;  %v2662_v9 = vadd.f32 1.0, %v3759_v42  ;;  %v2602_v30 = vadd.f32 %v4724_v6, %v2579_v62  ;;  %v2580_v19 = vmul.f32 %v4716_v16, %v2557_v41  ;;  %v2487_v2 = vpop.xlane.xlu1 %2486  ;;  %v2615_v62 = vmul.f32 0.5, %v2599_v59 }
 0x59e   : > { %3768 = verf.f32 %v2629_v29  ;;  %v2554_v0 = vmul.f32 %v3761_v52, %v4651_v58  ;;  %v2529_v50 = vadd.f32 1e-05, %v2513_v48  ;;  %v2510_v44 = vmul.f32 0.015625, %v2487_v2  ;;  %v3763_v4 = vpop.eup %3762 }
 0x59f   : > { %v2678_v49 = vmul.f32 %v2662_v9, %v2614_v60  ;;  %v2634_v56 = vmul.f32 0.70710677, %v2602_v30  ;;  %v2603_v53 = vadd.f32 %v4724_v6, %v2580_v19  ;;  %v2555_v54 = vmul.f32 %v3763_v4, %v4657_v61  ;;  %v2489_v17 = vpop.xlane.xlu0 %2488 }
 0x5a0   : > { %v3765_v32 = vpop.eup %3764  ;;  %v2577_v10 = vmul.f32 %v4716_v16, %v2554_v0  ;;  %3770 = vrsqrt.f32 %v2528_v63  ;;  %v2526_v24 = vadd.f32 1e-05, %v2510_v44  ;;  %v2511_v61 = vmul.f32 0.015625, %v2489_v17 }
 0x5a1   : > { %v4747_v20 = vadd.f32 %v2678_v49, %v4484_v12  ;;  %v2660_v58 = vadd.f32 1.0, %v3765_v32  ;;  %3772 = verf.f32 %v2634_v56  ;;  %v2635_v25 = vmul.f32 0.70710677, %v2603_v53 }
 0x5a2   : > { %v2600_v26 = vadd.f32 %v4724_v6, %v2577_v10  ;;  %v2578_v31 = vmul.f32 %v4716_v16, %v2555_v54  ;;  %3774 = vrsqrt.f32 %v2529_v50  ;;  %v2527_v40 = vadd.f32 1e-05, %v2511_v61 }
 0x5a3   : > { %2710 = vst [vmem:[#allocation2 + $0x10] sm:$0xff] %v4747_v20  ;;  %v2676_v15 = vmul.f32 %v2660_v58, %v2612_v22  ;;  %3776 = vrsqrt.f32 %v2526_v24  ;;  %v2613_v52 = vmul.f32 0.5, %v2597_v36  ;;  %v2618_v44 = vmul.f32 0.5, %v2602_v30 }
 0x5a4   : > { %v3767_v27 = vpop.eup %3766  ;;  %3778 = verf.f32 %v2635_v25  ;;  %v2632_v39 = vmul.f32 0.70710677, %v2600_v26  ;;  %v2601_v12 = vadd.f32 %v4724_v6, %v2578_v31  ;;  %v2619_v49 = vmul.f32 0.5, %v2603_v53 }
 0x5a5   : > { %v4754_v23 = vadd.f32 %v2676_v15, %v4482_v8  ;;  %v2663_v41 = vadd.f32 1.0, %v3767_v27  ;;  %v2616_v22 = vmul.f32 0.5, %v2600_v26 }
 0x5a6   : > { %3780 = verf.f32 %v2632_v39  ;;  %v2633_v42 = vmul.f32 0.70710677, %v2601_v12 }
 0x5a7   : > { %2708 = vst [vmem:[#allocation2] sm:$0xff] %v4754_v23  ;;  %v2679_v29 = vmul.f32 %v2663_v41, %v2615_v62  ;;  %3782 = vrsqrt.f32 %v2527_v40 }
 0x5a8   : > { %v3769_v63 = vpop.eup %3768  ;;  %3784 = verf.f32 %v2633_v42 }
 0x5a9   : > { %v4758_v48 = vadd.f32 %v2679_v29, %v4488_v18  ;;  %v2661_v60 = vadd.f32 1.0, %v3769_v63 }
 0x5aa   : > { %v3771_v9 = vpop.eup %3770  ;;  %v2495_v19 = vpop.xlane.xlu1 %2494 }
 0x5ab   : > { %v3773_v8 = vpop.eup %3772  ;;  %2711 = vst [vmem:[#allocation2 + $0x18] sm:$0xff] %v4758_v48  ;;  %v2677_v59 = vmul.f32 %v2661_v60, %v2613_v52  ;;  %v2560_v2 = vmul.f32 %v3771_v9, %v4665_v13  ;;  %v2514_v0 = vmul.f32 0.015625, %v2495_v19 }
 0x5ac   : > { %v3775_v50 = vpop.eup %3774  ;;  %v2666_v4 = vadd.f32 1.0, %v3773_v8  ;;  %v2497_v56 = vpop.xlane.xlu0 %2496 }
 0x5ad   : > { %v3777_v32 = vpop.eup %3776  ;;  %v4763_v18 = vadd.f32 %v2677_v59, %v4486_v14  ;;  %v2583_v36 = vmul.f32 %v4716_v16, %v2560_v2  ;;  %v2561_v10 = vmul.f32 %v3775_v50, %v4669_v43  ;;  %v2530_v54 = vadd.f32 1e-05, %v2514_v0 }
 0x5ae   : > { %v3779_v24 = vpop.eup %3778  ;;  %v2682_v17 = vmul.f32 %v2666_v4, %v2618_v44  ;;  %v2558_v13 = vmul.f32 %v3777_v32, %v4675_v28  ;;  %v2515_v58 = vmul.f32 0.015625, %v2497_v56  ;;  %v2499_v25 = vpop.xlane.xlu1 %2498  ;;  %v2617_v43 = vmul.f32 0.5, %v2601_v12 }
 0x5af   : > { %2709 = vst [vmem:[#allocation2 + $0x8] sm:$0xff] %v4763_v18  ;;  %v2667_v30 = vadd.f32 1.0, %v3779_v24  ;;  %v2606_v53 = vadd.f32 %v4724_v6, %v2583_v36  ;;  %v2584_v14 = vmul.f32 %v4716_v16, %v2561_v10  ;;  %3786 = vrsqrt.f32 %v2530_v54 }
 0x5b0   : > { %v3781_v31 = vpop.eup %3780  ;;  %v4772_v15 = vadd.f32 %v2682_v17, %v4503_v51  ;;  %v2581_v61 = vmul.f32 %v4716_v16, %v2558_v13  ;;  %v2531_v26 = vadd.f32 1e-05, %v2515_v58  ;;  %v2516_v41 = vmul.f32 0.015625, %v2499_v25  ;;  %v2501_v60 = vpop.xlane.xlu0 %2500 }
 0x5b1   : > { %v3783_v27 = vpop.eup %3782  ;;  %v2683_v28 = vmul.f32 %v2667_v30, %v2619_v49  ;;  %v2664_v39 = vadd.f32 1.0, %v3781_v31  ;;  %v2638_v62 = vmul.f32 0.70710677, %v2606_v53  ;;  %v2607_v42 = vadd.f32 %v4724_v6, %v2584_v14 }
 0x5b2   : > { %v3785_v40 = vpop.eup %3784  ;;  %2714 = vst [vmem:[#allocation2 + $0x30] sm:$0xff] %v4772_v15  ;;  %v2604_v29 = vadd.f32 %v4724_v6, %v2581_v61  ;;  %v2559_v63 = vmul.f32 %v3783_v27, %v4681_v38  ;;  %3788 = vrsqrt.f32 %v2531_v26  ;;  %v2532_v0 = vadd.f32 1e-05, %v2516_v41 }
 0x5b3   : > { %v4780_v51 = vadd.f32 %v2683_v28, %v4505_v46  ;;  %v2680_v12 = vmul.f32 %v2664_v39, %v2616_v22  ;;  %v2665_v52 = vadd.f32 1.0, %v3785_v40  ;;  %3790 = verf.f32 %v2638_v62 }
 0x5b4   : > { %v2639_v9 = vmul.f32 0.70710677, %v2607_v42  ;;  %v2636_v19 = vmul.f32 0.70710677, %v2604_v29  ;;  %v2582_v2 = vmul.f32 %v4716_v16, %v2559_v63  ;;  %v2517_v38 = vmul.f32 0.015625, %v2501_v60 }
 0x5b5   : > { %2715 = vst [vmem:[#allocation2 + $0x38] sm:$0xff] %v4780_v51  ;;  %v4784_v8 = vadd.f32 %v2680_v12, %v4495_v33  ;;  %v2681_v59 = vmul.f32 %v2665_v52, %v2617_v43  ;;  %v2622_v10 = vmul.f32 0.5, %v2606_v53  ;;  %v2623_v30 = vmul.f32 0.5, %v2607_v42 }
 0x5b6   : > { %3792 = verf.f32 %v2639_v9  ;;  %v2605_v50 = vadd.f32 %v4724_v6, %v2582_v2  ;;  %v2533_v44 = vadd.f32 1e-05, %v2517_v38  ;;  %v2620_v61 = vmul.f32 0.5, %v2604_v29 }
 0x5b7   : > { %2712 = vst [vmem:[#allocation2 + $0x20] sm:$0xff] %v4784_v8  ;;  %v4789_v46 = vadd.f32 %v2681_v59, %v4497_v34  ;;  %3794 = verf.f32 %v2636_v19 }
 0x5b8   : > { %3796 = vrsqrt.f32 %v2532_v0  ;;  %v2637_v33 = vmul.f32 0.70710677, %v2605_v50  ;;  %v2621_v29 = vmul.f32 0.5, %v2605_v50 }
 0x5b9   : > { %v3787_v4 = vpop.eup %3786  ;;  %2713 = vst [vmem:[#allocation2 + $0x28] sm:$0xff] %v4789_v46  ;;  %3798 = vrsqrt.f32 %v2533_v44 }
 0x5ba   : > { %v2562_v49 = vmul.f32 %v3787_v4, %v4689_v45  ;;  %3800 = verf.f32 %v2637_v33 }
 0x5bc   : > { %v3789_v56 = vpop.eup %3788  ;;  %v2585_v32 = vmul.f32 %v4716_v16, %v2562_v49 }
 0x5bd   : > { %v3791_v36 = vpop.eup %3790  ;;  %v2563_v34 = vmul.f32 %v3789_v56, %v4693_v11 }
 0x5be   : > { %v2670_v54 = vadd.f32 1.0, %v3791_v36  ;;  %v2608_v24 = vadd.f32 %v4724_v6, %v2585_v32 }
 0x5bf   : > { %v2586_v17 = vmul.f32 %v4716_v16, %v2563_v34 }
 0x5c0   : > { %v3793_v22 = vpop.eup %3792  ;;  %v2686_v13 = vmul.f32 %v2670_v54, %v2622_v10  ;;  %v2640_v58 = vmul.f32 0.70710677, %v2608_v24  ;;  %v3811_v54 = vld [vmem:[%s4934_s12 + $0x8] sm:$0xff] (!%p3237_p6)  }
 0x5c1   : > { %v3795_v25 = vpop.eup %3794  ;;  %v2671_v45 = vadd.f32 1.0, %v3793_v22  ;;  %v2609_v14 = vadd.f32 %v4724_v6, %v2586_v17  ;;  %v3815_v17 = vld [vmem:[%s4934_s12 + $0x28] sm:$0xff] (!%p3237_p6)   ;;  %v3816_v22 = vld [vmem:[%s4934_s12 + $0x30] sm:$0xff] (!%p3237_p6)  }
 0x5c2   : > { %v3797_v31 = vpop.eup %3796  ;;  %v4800_v43 = vadd.f32 %v2686_v13, %v4517_v5  ;;  %v2668_v11 = vadd.f32 1.0, %v3795_v25  ;;  %3802 = verf.f32 %v2640_v58  ;;  %v3817_v13 = vld [vmem:[%s4934_s12 + $0x38] sm:$0xff] (!%p3237_p6)   ;;  %v2729_v58 = vpack.c.bf16 (!%p3237_p6), %v4758_v48, %v4747_v20  ;;  %v3238_v20 = vld [vmem:[%s4950_s26] ss:$0 sm:$0xff] (!%p3237_p6) }
 0x5c3   : > { %v2687_v53 = vmul.f32 %v2671_v45, %v2623_v30  ;;  %v2641_v26 = vmul.f32 0.70710677, %v2609_v14  ;;  %v2564_v27 = vmul.f32 %v3797_v31, %v4699_v47  ;;  %v3799_v28 = vpop.eup %3798  ;;  %v2625_v38 = vmul.f32 0.5, %v2609_v14 }
 0x5c4   : > { %2718 = vst [vmem:[#allocation2 + $0x50] sm:$0xff] %v4800_v43  ;;  %v2684_v39 = vmul.f32 %v2668_v11, %v2620_v61  ;;  %v3801_v62 = vpop.eup %3800  ;;  %v2565_v5 = vmul.f32 %v3799_v28, %v4705_v3  ;;  %v2730_v30 = vpack.c.bf16 (!%p3237_p6), %v4789_v46, %v4784_v8  ;;  %v2731_v14 = vpack.c.bf16 (!%p3237_p6), %v4780_v51, %v4772_v15 }
 0x5c5   : > { %v4805_v41 = vadd.f32 %v2687_v53, %v4519_v7  ;;  %3804 = verf.f32 %v2641_v26  ;;  %v2587_v40 = vmul.f32 %v4716_v16, %v2564_v27  ;;  %v2669_v63 = vadd.f32 1.0, %v3801_v62 }
 0x5c6   : > { %v2700_v42 = vadd.f32 %v2684_v39, %v4511_v55  ;;  %v2588_v12 = vmul.f32 %v4716_v16, %v2565_v5  ;;  %v2624_v55 = vmul.f32 0.5, %v2608_v24  ;;  %v2728_v24 = vpack.c.bf16 (!%p3237_p6), %v4763_v18, %v4754_v23  ;;  %v3813_v23 = vld [vmem:[%s4934_s12 + $0x18] sm:$0xff] (!%p3237_p6)   ;;  %v3814_v18 = vld [vmem:[%s4934_s12 + $0x20] sm:$0xff] (!%p3237_p6)  }
 0x5c7   : > { %2719 = vst [vmem:[#allocation2 + $0x58] sm:$0xff] %v4805_v41  ;;  %v2610_v47 = vadd.f32 %v4724_v6, %v2587_v40  ;;  %v2685_v52 = vmul.f32 %v2669_v63, %v2621_v29  ;;  %v2733_v25 = vpack.c.bf16 (!%p3237_p6), %v4805_v41, %v4800_v43 }
 0x5c8   : > { %2716 = vst [vmem:[#allocation2 + $0x40] sm:$0xff] %v2700_v42  ;;  %v2611_v7 = vadd.f32 %v4724_v6, %v2588_v12  ;;  %3571 = vmatprep.mubr.bf16.mxu0 (!%p3237_p6), %v2728_v24 }
 0x5c9   : > { %v2642_v60 = vmul.f32 0.70710677, %v2610_v47  ;;  %v2701_v9 = vadd.f32 %v2685_v52, %v4513_v57  ;;  %v2626_v4 = vmul.f32 0.5, %v2610_v47 }
 0x5ca   : > { %v2643_v19 = vmul.f32 0.70710677, %v2611_v7  ;;  %v2627_v32 = vmul.f32 0.5, %v2611_v7 }
 0x5cb   : > { %3806 = verf.f32 %v2642_v60  ;;  %2717 = vst [vmem:[#allocation2 + $0x48] sm:$0xff] %v2701_v9 }
 0x5cc   : > { %v3803_v3 = vpop.eup %3802  ;;  %3808 = verf.f32 %v2643_v19 }
 0x5cd   : > { %v2672_v59 = vadd.f32 1.0, %v3803_v3 }
 0x5cf   : > { %v3805_v2 = vpop.eup %3804  ;;  %v2688_v0 = vmul.f32 %v2672_v59, %v2624_v55 }
 0x5d0   : > { %v2673_v50 = vadd.f32 1.0, %v3805_v2 }
 0x5d1   : > { %v4816_v16 = vadd.f32 %v2688_v0, %v4523_v21 }
 0x5d2   : > { %v2689_v44 = vmul.f32 %v2673_v50, %v2625_v38 }
 0x5d3   : > { %2720 = vst [vmem:[#allocation2 + $0x60] sm:$0xff] %v4816_v16 }
 0x5d4   : > { %v4820_v6 = vadd.f32 %v2689_v44, %v4525_v1  ;;  %v3810_v1 = vld [vmem:[%s4934_s12] sm:$0xff] (!%p3237_p6)  }
 0x5d5   : > { %v3807_v57 = vpop.eup %3806  ;;  %3555 = vmatprep.subr.bf16.mxu0 (!%p3237_p6), %v3810_v1  ;;  %3667 = vmatprep.subr.bf16.mxu1 (!%p3237_p6), %v3810_v1 }
 0x5d6   : > { %2721 = vst [vmem:[#allocation2 + $0x68] sm:$0xff] %v4820_v6  ;;  %v2674_v33 = vadd.f32 1.0, %v3807_v57  ;;  %v3809_v49 = vpop.eup %3808  ;;  %3556 = vmatpush3.bf16.msra.mxu0 (!%p3237_p6), %v3810_v1  ;;  %3675 = vmatpush3.bf16.msra.mxu1 (!%p3237_p6), %v3810_v1  ;;  %v2734_v45 = vpack.c.bf16 (!%p3237_p6), %v4820_v6, %v4816_v16 }
 0x5d7   : > { %v2675_v36 = vadd.f32 1.0, %v3809_v49  ;;  %2727 = sbr.rel (%p3237_p6) target bundleno = 1751 (0x6d7), region = 92  ;;  %3557 = vmatprep.subr.bf16.mxu0 (!%p3237_p6), %v3811_v54  ;;  %3668 = vmatprep.subr.bf16.mxu1 (!%p3237_p6), %v3811_v54 }
 0x5d8   : > { %v2690_v56 = vmul.f32 %v2674_v33, %v2626_v4 }
 0x5d9   : > { %v2691_v10 = vmul.f32 %v2675_v36, %v2627_v32 }
 0x5da   : > { %v2706_v34 = vadd.f32 %v2690_v56, %v4529_v35  ;;  %v2732_v35 = vpack.c.bf16 (!%p3237_p6), %v2701_v9, %v2700_v42  ;;  %3558 = vmatpush3.bf16.msra.mxu0 (!%p3237_p6), %v3811_v54  ;;  %3676 = vmatpush3.bf16.msra.mxu1 (!%p3237_p6), %v3811_v54 }
 0x5db   : > { %v2707_v21 = vadd.f32 %v2691_v10, %v4531_v37  ;;  %v3812_v37 = vld [vmem:[%s4934_s12 + $0x10] sm:$0xff] (!%p3237_p6)  }
 0x5dc   : > { %2722 = vst [vmem:[#allocation2 + $0x70] sm:$0xff] %v2706_v34  ;;  %3579 = vmatprep.mubr.bf16.mxu1 (!%p3237_p6), %v2732_v35  ;;  %3559 = vmatprep.subr.bf16.mxu0 (!%p3237_p6), %v3812_v37 }
 0x5dd   : > { %2723 = vst [vmem:[#allocation2 + $0x78] sm:$0xff] %v2707_v21  ;;  %3669 = vmatprep.subr.bf16.mxu1 (!%p3237_p6), %v3812_v37  ;;  %v2735_v31 = vpack.c.bf16 (!%p3237_p6), %v2707_v21, %v2706_v34 }
 0x5de   : > { %3560 = vmatpush3.bf16.msra.mxu0 %v3812_v37  ;;  %3677 = vmatpush3.bf16.msra.mxu1 %v3812_v37 }
 0x5df   : > { %3561 = vmatprep.subr.bf16.mxu0 %v3813_v23  ;;  %3670 = vmatprep.subr.bf16.mxu1 %v3813_v23 }
 0x5e2   : > { %3562 = vmatpush3.bf16.msra.mxu0 %v3813_v23  ;;  %3678 = vmatpush3.bf16.msra.mxu1 %v3813_v23 }
 0x5e3   : > { %3563 = vmatprep.subr.bf16.mxu0 %v3814_v18  ;;  %3671 = vmatprep.subr.bf16.mxu1 %v3814_v18 }
 0x5e6   : > { %3564 = vmatpush3.bf16.msra.mxu0 %v3814_v18  ;;  %3679 = vmatpush3.bf16.msra.mxu1 %v3814_v18 }
 0x5e7   : > { %3565 = vmatprep.subr.bf16.mxu0 %v3815_v17  ;;  %3672 = vmatprep.subr.bf16.mxu1 %v3815_v17 }
 0x5ea   : > { %3566 = vmatpush3.bf16.msra.mxu0 %v3815_v17  ;;  %3680 = vmatpush3.bf16.msra.mxu1 %v3815_v17 }
 0x5eb   : > { %3567 = vmatprep.subr.bf16.mxu0 %v3816_v22  ;;  %3673 = vmatprep.subr.bf16.mxu1 %v3816_v22 }
 0x5ee   : > { %3568 = vmatpush3.bf16.msra.mxu0 %v3816_v22  ;;  %3681 = vmatpush3.bf16.msra.mxu1 %v3816_v22 }
 0x5ef   : > { %3569 = vmatprep.subr.bf16.mxu0 %v3817_v13  ;;  %3674 = vmatprep.subr.bf16.mxu1 %v3817_v13 }
 0x5f2   : > { %3570 = vmatpush3.bf16.msra.mxu0 %v3817_v13  ;;  %3682 = vmatpush3.bf16.msra.mxu1 %v3817_v13 }
 0x5f5   : > { %3572 = vmatmul.mubr.bf16.vlgmr.msra.gmra.mrb[0].mxu0 %v2729_v58  ;;  %3580 = vmatmul.mubr.bf16.vlgmr.msra.gmra.mrb[0].mxu1 %v2733_v25 }
 0x5f6   : > { %3575 = vmatprep.mubr.bf16.mxu0 %v2730_v30  ;;  %3583 = vmatprep.mubr.bf16.mxu1 %v2734_v45 }
 0x5fd   : > { %3576 = vmatmul.mubr.bf16.gmra.mrb[4].mxu0 %v2731_v14  ;;  %3584 = vmatmul.mubr.bf16.gmra.mrb[4].mxu1 %v2735_v31 }
 0x6c8   : > { %v3573_v48 = vpop.f32.mrb[0].mxu0  ;;  %v3581_v43 = vpop.f32.mrb[0].mxu1 }
 0x6c9   : > { %v2850_v8 = vadd.f32 %v3573_v48, %v3238_v20  ;;  %v2882_v46 = vadd.f32 %v3581_v43, %v3238_v20  ;;  %v2841_v61 = vpop.f32.mrb[1].mxu0  ;;  %v2873_v11 = vpop.f32.mrb[1].mxu1 }
 0x6ca   : > { %v2842_v53 = vadd.f32 %v3238_v20, %v2841_v61  ;;  %v2874_v26 = vadd.f32 %v3238_v20, %v2873_v11  ;;  %v3574_v27 = vpop.f32.mrb[2].mxu0  ;;  %v3582_v28 = vpop.f32.mrb[2].mxu1 }
 0x6cb   : > { %2906 = vst [vmem:[%s4951_s6 + $0x10] sm:$0xff] %v2850_v8  ;;  %2914 = vst [vmem:[%s4951_s6 + $0x50] sm:$0xff] %v2882_v46  ;;  %v2853_v15 = vadd.f32 %v3574_v27, %v3238_v20  ;;  %v2885_v51 = vadd.f32 %v3582_v28, %v3238_v20  ;;  %v2844_v39 = vpop.f32.mrb[3].mxu0  ;;  %v2876_v62 = vpop.f32.mrb[3].mxu1 }
 0x6cc   : > { %2904 = vst [vmem:[%s4951_s6] sm:$0xff] %v2842_v53  ;;  %2912 = vst [vmem:[%s4951_s6 + $0x40] sm:$0xff] %v2874_v26  ;;  %v2845_v41 = vadd.f32 %v3238_v20, %v2844_v39  ;;  %v2877_v40 = vadd.f32 %v3238_v20, %v2876_v62 }
 0x6cd   : > { %2907 = vst [vmem:[%s4951_s6 + $0x18] sm:$0xff] %v2853_v15  ;;  %2915 = vst [vmem:[%s4951_s6 + $0x58] sm:$0xff] %v2885_v51 }
 0x6ce   : > { %2905 = vst [vmem:[%s4951_s6 + $0x8] sm:$0xff] %v2845_v41  ;;  %2913 = vst [vmem:[%s4951_s6 + $0x48] sm:$0xff] %v2877_v40 }
 0x6d0   : > { %v3577_v5 = vpop.f32.mrb[4].mxu0  ;;  %v3585_v42 = vpop.f32.mrb[4].mxu1 }
 0x6d1   : > { %v2866_v29 = vadd.f32 %v3577_v5, %v3238_v20  ;;  %v2898_v63 = vadd.f32 %v3585_v42, %v3238_v20  ;;  %v2857_v47 = vpop.f32.mrb[5].mxu0  ;;  %v2889_v12 = vpop.f32.mrb[5].mxu1 }
 0x6d2   : > { %v2858_v52 = vadd.f32 %v3238_v20, %v2857_v47  ;;  %v2890_v60 = vadd.f32 %v3238_v20, %v2889_v12  ;;  %v3578_v7 = vpop.f32.mrb[6].mxu0  ;;  %v3586_v9 = vpop.f32.mrb[6].mxu1 }
 0x6d3   : > { %2910 = vst [vmem:[%s4951_s6 + $0x30] sm:$0xff] %v2866_v29  ;;  %2918 = vst [vmem:[%s4951_s6 + $0x70] sm:$0xff] %v2898_v63  ;;  %v2869_v19 = vadd.f32 %v3578_v7, %v3238_v20  ;;  %v2901_v3 = vadd.f32 %v3586_v9, %v3238_v20  ;;  %v2860_v55 = vpop.f32.mrb[7].mxu0  ;;  %v2892_v59 = vpop.f32.mrb[7].mxu1 }
 0x6d4   : > { %2908 = vst [vmem:[%s4951_s6 + $0x20] sm:$0xff] %v2858_v52  ;;  %2916 = vst [vmem:[%s4951_s6 + $0x60] sm:$0xff] %v2890_v60  ;;  %v2861_v2 = vadd.f32 %v3238_v20, %v2860_v55  ;;  %v2893_v0 = vadd.f32 %v3238_v20, %v2892_v59 }
 0x6d5   : > { %2911 = vst [vmem:[%s4951_s6 + $0x38] sm:$0xff] %v2869_v19  ;;  %2919 = vst [vmem:[%s4951_s6 + $0x78] sm:$0xff] %v2901_v3 }
 0x6d6   : > { %2909 = vst [vmem:[%s4951_s6 + $0x28] sm:$0xff] %v2861_v2  ;;  %2917 = vst [vmem:[%s4951_s6 + $0x68] sm:$0xff] %v2893_v0 }
 0x6d7 PF: > { %s4952_s22 = sld [smem:[#allocation5_spill]]  ;;  %s4953_s29 = sld [smem:[#allocation4_spill]] }
 0x6d8   : > { %s4954_s30 = sld [smem:[#allocation6_spill]] }
 0x6dd   : > { %s24_s15 = sadd.s32 1, %s4952_s22  }
 0x6de   : > { %p21_p7 = scmp.ge.s32.totalorder %s24_s15, 5  }
 0x6e0   :  { %23 = sbr.rel (!%p21_p7) target bundleno = 5 (0x5), region = 148 }

</bundles_post_ra>
